<compile_context>
chip_gen: v6e
topology: v6e:2x2x1
jax: 0.10.0
libtpu: 0.0.40
codegen_flags: <defaults>
</compile_context>

<pallas_src>
import functools

import numpy as np
import jax
import jax.numpy as jnp
from jax.experimental import pallas as pl
from jax.experimental.pallas import tpu as pltpu

BN_EPS = 1e-5


# ----------------------------------------------------------------------------
# Graph construction (pure numpy glue, identical to the PyTorch reference)
# ----------------------------------------------------------------------------
def get_directed_hop_distance(num_node, edge, max_hop=1):
    A = np.zeros((num_node, num_node))
    for i, j in edge:
        if i < j:
            A[i, j] = 1
        else:
            A[j, i] = 2
    hop_dis = np.zeros((num_node, num_node)) + np.inf
    transfer_mat = [np.linalg.matrix_power(A, d) for d in range(max_hop + 1)]
    arrive_mat = np.stack(transfer_mat) > 0
    for d in range(max_hop, -1, -1):
        hop_dis[arrive_mat[d]] = d
    return hop_dis


def normalize_digraph(A):
    Dl = np.sum(A, 0)
    num_node = A.shape[0]
    Dn = np.zeros((num_node, num_node))
    for i in range(num_node):
        if Dl[i] > 0:
            Dn[i, i] = Dl[i] ** (-1)
    return np.dot(A, Dn)


def build_h36m_directed_graph():
    num_node = 17
    self_link = [(i, i) for i in range(num_node)]
    neighbor_link = [(0, 1), (1, 2), (2, 3), (0, 4), (4, 5), (5, 6), (0, 7),
                     (7, 8), (8, 9), (9, 10), (8, 11), (11, 12), (12, 13),
                     (8, 14), (14, 15), (15, 16)]
    edge = self_link + neighbor_link
    source_nodes = np.array([n[0] for n in neighbor_link], dtype=np.int32)
    target_nodes = np.array([n[1] for n in neighbor_link], dtype=np.int32)
    hop_dis = get_directed_hop_distance(num_node, edge, max_hop=1)
    adjacency = np.zeros((2, num_node, num_node))
    A = np.zeros((3, num_node, num_node))
    adjacency[0][hop_dis == 1] = 1
    A[0] = normalize_digraph(adjacency[0])
    adjacency[1][hop_dis == 0] = 1
    A[1] = normalize_digraph(adjacency[1])
    A[2] = normalize_digraph(adjacency[0].T)
    return A.astype(np.float32), source_nodes, target_nodes, num_node, len(neighbor_link)


# ----------------------------------------------------------------------------
# Fused Pallas kernel: one batch sample per grid step, channel-first layout
#   x block: (1, C, T*V)   e block: (1, C, T*E)   outputs: (1, OC, T*V/T*E)
# ----------------------------------------------------------------------------
def _st_gcn_kernel(x_ref, e_ref,
                   w1m_ref, b1m_ref, w2b_ref, b2b_ref,
                   g0v_ref, g2v_ref, g0e_ref, g2e_ref,
                   sx_ref, se_ref,
                   s1x_ref, t1x_ref, wcx_ref, bcx_ref,
                   s1e_ref, t1e_ref, wce_ref, bce_ref,
                   ox_ref, oe_ref, *, K0):
    f32 = jnp.float32
    x = x_ref[0]                                   # (C, T*V) -- also the residual
    e = e_ref[0]                                   # (C, T*E) -- also the residual

    # --- 1x1 convs + bias + ReLU (channel-first => lane-dense results) -------
    # conv1: only the middle (self-loop) branch is consumed downstream.
    x1m = jnp.maximum(
        jnp.dot(w1m_ref[...], x, preferred_element_type=f32) + b1m_ref[...], 0.0)
    # conv2: three branches as three small dots (no sublane slicing needed).
    e1 = [jnp.maximum(
        jnp.dot(w2b_ref[k], e, preferred_element_type=f32) + b2b_ref[k], 0.0)
        for k in range(3)]                         # each (C, T*E)

    # --- directed graph aggregation (pre-composed block-diagonal operators) --
    xk0 = jnp.dot(e1[0], g0v_ref[...], preferred_element_type=f32)   # (C, T*V)
    xk2 = jnp.dot(e1[2], g2v_ref[...], preferred_element_type=f32)   # (C, T*V)
    ek0 = jnp.dot(e1[0], g0e_ref[...], preferred_element_type=f32)   # (C, T*E)
    ek2 = jnp.dot(e1[2], g2e_ref[...], preferred_element_type=f32)   # (C, T*E)
    x_sum = xk0 + x1m + xk2
    e_sum = ek0 + e1[1] + ek2

    # --- tcn: BN1+ReLU -> temporal K0-tap conv -> BN2 -> +res -> ReLU --------
    def tcn(y_sum, res, shift_ref, s1, t1, wc3_ref, bc):
        y2 = jnp.maximum(y_sum * s1 + t1, 0.0)                 # folded BN1 + ReLU
        acc = bc + res                                         # folded BN2 bias + residual
        for k in range(K0):
            # tap k = y2 shifted by (k - pad) timesteps with zero padding,
            # realized as a lane-dense dot with a precomputed banded operator.
            tap = jnp.dot(y2, shift_ref[k], preferred_element_type=f32)
            acc = acc + jnp.dot(wc3_ref[k], tap, preferred_element_type=f32)
        return jnp.maximum(acc, 0.0)

    ox_ref[0] = tcn(x_sum, x, sx_ref, s1x_ref[...], t1x_ref[...], wcx_ref, bcx_ref[...])
    oe_ref[0] = tcn(e_sum, e, se_ref, s1e_ref[...], t1e_ref[...], wce_ref, bce_ref[...])


# ----------------------------------------------------------------------------
# Wrapper: parameter folding (done once) + the single gridded pallas_call
# ----------------------------------------------------------------------------
def prepare_operands(params, A_np, src, tgt, T, C, OC, K0):
    """Folds BN, pre-composes graph/gather/temporal operators. Runs once."""
    pad = (K0 - 1) // 2
    E, V = A_np.shape[2] - 1, A_np.shape[2]
    A0r = A_np[0, 1:]                       # (E, V)
    A2r = A_np[2, 1:]                       # (E, V)
    I_T = np.eye(T, dtype=np.float32)

    # Block-diagonal graph operators: per-t matmul + source/target gather folded.
    g0v = jnp.asarray(np.kron(I_T, A0r))            # (T*E, T*V)
    g2v = jnp.asarray(np.kron(I_T, A2r))            # (T*E, T*V)
    g0e = jnp.asarray(np.kron(I_T, A0r[:, src]))    # (T*E, T*E)
    g2e = jnp.asarray(np.kron(I_T, A2r[:, tgt]))    # (T*E, T*E)

    # Banded temporal shift operators (zero padding at the clip boundaries).
    def shift_stack(width):
        nl = T * width
        return jnp.asarray(np.stack(
            [np.eye(nl, k=-(k - pad) * width, dtype=np.float32) for k in range(K0)]))
    sx = shift_stack(V)                              # (K0, T*V, T*V)
    se = shift_stack(E)                              # (K0, T*E, T*E)

    # conv1: only the middle branch is used by the forward pass.
    w1m = params['w1'][:, C:2 * C].T                 # (C_out, C_in)
    b1m = params['b1'][C:2 * C].reshape(C, 1)
    # conv2: (branch, C_out, C_in) so the kernel indexes branches without slicing.
    w2b = jnp.transpose(params['w2'].reshape(C, 3, C), (1, 2, 0))
    b2b = params['b2'].reshape(3, C, 1)

    def fold_tcn(p):
        s1 = p['g1'] / jnp.sqrt(p['v1'] + BN_EPS)
        t1 = p['be1'] - p['m1'] * s1
        s2 = p['g2'] / jnp.sqrt(p['v2'] + BN_EPS)
        t2 = p['be2'] - p['m2'] * s2
        wc = p['wc'] * s2[None, :]                                   # fold BN2 scale
        wc3 = jnp.transpose(wc.reshape(K0, C, OC), (0, 2, 1))        # (K0, OC, C_in)
        bc = (p['bc'] * s2 + t2).reshape(OC, 1)                      # fold BN2 shift
        return s1.reshape(C, 1), t1.reshape(C, 1), wc3, bc

    s1x, t1x, wcx, bcx = fold_tcn(params['tcn1'])
    s1e, t1e, wce, bce = fold_tcn(params['tcn2'])

    return (w1m, b1m, w2b, b2b, g0v, g2v, g0e, g2e, sx, se,
            s1x, t1x, wcx, bcx, s1e, t1e, wce, bce)


def make_st_gcn_forward(N, C, OC, T, V, E, K0):
    assert OC == C, "identity residual requires in_channels == out_channels"
    TV, TE = T * V, T * E
    kern = functools.partial(_st_gcn_kernel, K0=K0)

    def act_spec(width):
        return pl.BlockSpec((1, C, width), lambda n: (n, 0, 0))

    def full_spec(*shape):
        nd = len(shape)
        return pl.BlockSpec(shape, lambda n: (0,) * nd)

    in_specs = [
        act_spec(TV), act_spec(TE),
        full_spec(C, C), full_spec(C, 1),
        full_spec(3, C, C), full_spec(3, C, 1),
        full_spec(TE, TV), full_spec(TE, TV),
        full_spec(TE, TE), full_spec(TE, TE),
        full_spec(K0, TV, TV), full_spec(K0, TE, TE),
        full_spec(C, 1), full_spec(C, 1), full_spec(K0, OC, C), full_spec(OC, 1),
        full_spec(C, 1), full_spec(C, 1), full_spec(K0, OC, C), full_spec(OC, 1),
    ]
    out_specs = (pl.BlockSpec((1, OC, TV), lambda n: (n, 0, 0)),
                 pl.BlockSpec((1, OC, TE), lambda n: (n, 0, 0)))

    call = pl.pallas_call(
        kern,
        out_shape=(jax.ShapeDtypeStruct((N, OC, TV), jnp.float32),
                   jax.ShapeDtypeStruct((N, OC, TE), jnp.float32)),
        grid=(N,),
        in_specs=in_specs,
        out_specs=out_specs,
        compiler_params=pltpu.CompilerParams(dimension_semantics=("parallel",)),
    )

    @jax.jit
    def forward(x, e, ops):
        # NCHW -> channel-first slabs: pure reshapes, no transposes.
        x2d = x.reshape(N, C, TV)
        e2d = e.reshape(N, C, TE)
        ox, oe = call(x2d, e2d, *ops)
        return ox.reshape(N, OC, T, V), oe.reshape(N, OC, T, E)

    return forward


# ----------------------------------------------------------------------------
# Plain-JAX reference (mirrors the PyTorch forward, eval-mode BN) for checking
# ----------------------------------------------------------------------------
def st_gcn_reference(x, e, params, A_np, src, tgt, K0):
    N, C, T, V = x.shape
    E = e.shape[3]
    A0r = jnp.asarray(A_np[0, 1:])
    A2r = jnp.asarray(A_np[2, 1:])
    res_x, res_e = x, e

    def conv1x1(z, w, b):
        return jax.nn.relu(jnp.einsum('nctw,co->notw', z, w) + b[None, :, None, None])

    x1 = conv1x1(x, params['w1'], params['b1']).reshape(N, 3, C, T, V)
    e1 = conv1x1(e, params['w2'], params['b2']).reshape(N, 3, C, T, E)

    xk0 = jnp.einsum('ncte,ev->nctv', e1[:, 0], A0r)
    xk2 = jnp.einsum('ncte,ev->nctv', e1[:, 2], A2r)
    x_sum = xk0 + x1[:, 1] + xk2
    e_sum = xk0[:, :, :, src] + e1[:, 1] + xk2[:, :, :, tgt]

    def tcn(y, res, p):
        s1 = p['g1'] / jnp.sqrt(p['v1'] + BN_EPS); t1 = p['be1'] - p['m1'] * s1
        s2 = p['g2'] / jnp.sqrt(p['v2'] + BN_EPS); t2 = p['be2'] - p['m2'] * s2
        y = jax.nn.relu(y * s1[None, :, None, None] + t1[None, :, None, None])
        pad = (K0 - 1) // 2
        yp = jnp.pad(y, ((0, 0), (0, 0), (pad, pad), (0, 0)))
        wc = p['wc'].reshape(K0, C, -1)
        conv = sum(jnp.einsum('nctw,co->notw', yp[:, :, k:k + T], wc[k]) for k in range(K0))
        conv = conv + p['bc'][None, :, None, None]
        out = conv * s2[None, :, None, None] + t2[None, :, None, None] + res
        return jax.nn.relu(out)

    return tcn(x_sum, res_x, params['tcn1']), tcn(e_sum, res_e, params['tcn2'])


# ----------------------------------------------------------------------------
# Deterministic parameter init (synthetic — no checkpoint load)
# ----------------------------------------------------------------------------
def init_params(key, C, OC, K0):
    ks = jax.random.split(key, 6)

    def tcn_params(k):
        kk = jax.random.split(k, 10)
        return dict(
            g1=1.0 + 0.1 * jax.random.normal(kk[0], (C,), jnp.float32),
            be1=0.1 * jax.random.normal(kk[1], (C,), jnp.float32),
            m1=0.1 * jax.random.normal(kk[2], (C,), jnp.float32),
            v1=jax.random.uniform(kk[3], (C,), jnp.float32, 0.5, 1.5),
            wc=0.3 * jax.random.normal(kk[4], (K0 * C, OC), jnp.float32),
            bc=0.1 * jax.random.normal(kk[5], (OC,), jnp.float32),
            g2=1.0 + 0.1 * jax.random.normal(kk[6], (OC,), jnp.float32),
            be2=0.1 * jax.random.normal(kk[7], (OC,), jnp.float32),
            m2=0.1 * jax.random.normal(kk[8], (OC,), jnp.float32),
            v2=jax.random.uniform(kk[9], (OC,), jnp.float32, 0.5, 1.5),
        )

    return dict(
        w1=0.3 * jax.random.normal(ks[0], (C, 3 * C), jnp.float32),
        b1=0.1 * jax.random.normal(ks[1], (3 * C,), jnp.float32),
        w2=0.3 * jax.random.normal(ks[2], (C, 3 * C), jnp.float32),
        b2=0.1 * jax.random.normal(ks[3], (3 * C,), jnp.float32),
        tcn1=tcn_params(ks[4]),
        tcn2=tcn_params(ks[5]),
    )


if __name__ == "__main__":
    # Small shapes consistent with the module: V=17 nodes (h36m), E=16 edges.
    N, C, T, K0 = 2, 4, 8, 3      # in_channels == out_channels, stride==1 -> identity residual
    OC = C
    A_np, src, tgt, V, E = build_h36m_directed_graph()

    key = jax.random.PRNGKey(0)
    kx, ke, kp = jax.random.split(key, 3)
    x = jax.random.normal(kx, (N, C, T, V), jnp.float32)   # node features (NCHW)
    e = jax.random.normal(ke, (N, C, T, E), jnp.float32)   # edge features (NCHW)
    params = init_params(kp, C, OC, K0)

    ops = prepare_operands(params, A_np, src, tgt, T, C, OC, K0)
    forward = make_st_gcn_forward(N, C, OC, T, V, E, K0)

    out_x, out_e = forward(x, e, ops)
    jax.block_until_ready((out_x, out_e))

    assert out_x.shape == (N, OC, T, V)
    assert out_e.shape == (N, OC, T, E)
    assert bool(jnp.all(jnp.isfinite(out_x))) and bool(jnp.all(jnp.isfinite(out_e)))

    # Correctness check against a plain-JAX mirror of the PyTorch forward.
    ref_x, ref_e = st_gcn_reference(x, e, params, A_np, src, tgt, K0)
    np.testing.assert_allclose(np.asarray(out_x), np.asarray(ref_x), rtol=1e-4, atol=1e-4)
    np.testing.assert_allclose(np.asarray(out_e), np.asarray(ref_e), rtol=1e-4, atol=1e-4)

    print("KERNEL_OK")
</pallas_src>

<mosaic_0001>
module attributes {stable_mosaic.version = 11 : i64} {
  func.func @_st_gcn_kernel(%arg0: i32, %arg1: memref<1x4x136xf32, #tpu.memory_space<vmem>>, %arg2: memref<1x4x128xf32, #tpu.memory_space<vmem>>, %arg3: memref<4x4xf32, #tpu.memory_space<vmem>>, %arg4: memref<4x1xf32, #tpu.memory_space<vmem>>, %arg5: memref<3x4x4xf32, #tpu.memory_space<vmem>>, %arg6: memref<3x4x1xf32, #tpu.memory_space<vmem>>, %arg7: memref<128x136xf32, #tpu.memory_space<vmem>>, %arg8: memref<128x136xf32, #tpu.memory_space<vmem>>, %arg9: memref<128x128xf32, #tpu.memory_space<vmem>>, %arg10: memref<128x128xf32, #tpu.memory_space<vmem>>, %arg11: memref<3x136x136xf32, #tpu.memory_space<vmem>>, %arg12: memref<3x128x128xf32, #tpu.memory_space<vmem>>, %arg13: memref<4x1xf32, #tpu.memory_space<vmem>>, %arg14: memref<4x1xf32, #tpu.memory_space<vmem>>, %arg15: memref<3x4x4xf32, #tpu.memory_space<vmem>>, %arg16: memref<4x1xf32, #tpu.memory_space<vmem>>, %arg17: memref<4x1xf32, #tpu.memory_space<vmem>>, %arg18: memref<4x1xf32, #tpu.memory_space<vmem>>, %arg19: memref<3x4x4xf32, #tpu.memory_space<vmem>>, %arg20: memref<4x1xf32, #tpu.memory_space<vmem>>, %arg21: memref<1x4x136xf32, #tpu.memory_space<vmem>>, %arg22: memref<1x4x128xf32, #tpu.memory_space<vmem>>) attributes {dimension_semantics = [#tpu.dimension_semantics<parallel>], iteration_bounds = array<i64: 2>, scalar_prefetch = 0 : i64, scratch_operands = 0 : i64, tpu.core_type = #tpu.core_type<tc>, window_params = [{transform_indices = @transform_0, window_bounds = array<i64: 1, 4, 136>}, {transform_indices = @transform_1, window_bounds = array<i64: 1, 4, 128>}, {pipeline_mode = #tpu.pipeline_mode<synchronous>, transform_indices = @transform_2, window_bounds = array<i64: 4, 4>}, {pipeline_mode = #tpu.pipeline_mode<synchronous>, transform_indices = @transform_3, window_bounds = array<i64: 4, 1>}, {pipeline_mode = #tpu.pipeline_mode<synchronous>, transform_indices = @transform_4, window_bounds = array<i64: 3, 4, 4>}, {pipeline_mode = #tpu.pipeline_mode<synchronous>, transform_indices = @transform_5, window_bounds = array<i64: 3, 4, 1>}, {pipeline_mode = #tpu.pipeline_mode<synchronous>, transform_indices = @transform_6, window_bounds = array<i64: 128, 136>}, {pipeline_mode = #tpu.pipeline_mode<synchronous>, transform_indices = @transform_7, window_bounds = array<i64: 128, 136>}, {pipeline_mode = #tpu.pipeline_mode<synchronous>, transform_indices = @transform_8, window_bounds = array<i64: 128, 128>}, {pipeline_mode = #tpu.pipeline_mode<synchronous>, transform_indices = @transform_9, window_bounds = array<i64: 128, 128>}, {pipeline_mode = #tpu.pipeline_mode<synchronous>, transform_indices = @transform_10, window_bounds = array<i64: 3, 136, 136>}, {pipeline_mode = #tpu.pipeline_mode<synchronous>, transform_indices = @transform_11, window_bounds = array<i64: 3, 128, 128>}, {pipeline_mode = #tpu.pipeline_mode<synchronous>, transform_indices = @transform_12, window_bounds = array<i64: 4, 1>}, {pipeline_mode = #tpu.pipeline_mode<synchronous>, transform_indices = @transform_13, window_bounds = array<i64: 4, 1>}, {pipeline_mode = #tpu.pipeline_mode<synchronous>, transform_indices = @transform_14, window_bounds = array<i64: 3, 4, 4>}, {pipeline_mode = #tpu.pipeline_mode<synchronous>, transform_indices = @transform_15, window_bounds = array<i64: 4, 1>}, {pipeline_mode = #tpu.pipeline_mode<synchronous>, transform_indices = @transform_16, window_bounds = array<i64: 4, 1>}, {pipeline_mode = #tpu.pipeline_mode<synchronous>, transform_indices = @transform_17, window_bounds = array<i64: 4, 1>}, {pipeline_mode = #tpu.pipeline_mode<synchronous>, transform_indices = @transform_18, window_bounds = array<i64: 3, 4, 4>}, {pipeline_mode = #tpu.pipeline_mode<synchronous>, transform_indices = @transform_19, window_bounds = array<i64: 4, 1>}, {transform_indices = @transform_20, window_bounds = array<i64: 1, 4, 136>}, {transform_indices = @transform_21, window_bounds = array<i64: 1, 4, 128>}]} {
    %c0 = arith.constant 0 : index
    %c0_0 = arith.constant 0 : index
    %c0_1 = arith.constant 0 : index
    %0 = vector.load %arg1[%c0, %c0_0, %c0_1] : memref<1x4x136xf32, #tpu.memory_space<vmem>>, vector<1x4x136xf32>
    %1 = vector.shape_cast %0 : vector<1x4x136xf32> to vector<4x136xf32>
    %c0_2 = arith.constant 0 : index
    %c0_3 = arith.constant 0 : index
    %c0_4 = arith.constant 0 : index
    %2 = vector.load %arg2[%c0_2, %c0_3, %c0_4] : memref<1x4x128xf32, #tpu.memory_space<vmem>>, vector<1x4x128xf32>
    %3 = vector.shape_cast %2 : vector<1x4x128xf32> to vector<4x128xf32>
    %c0_5 = arith.constant 0 : index
    %c0_6 = arith.constant 0 : index
    %4 = vector.load %arg3[%c0_5, %c0_6] : memref<4x4xf32, #tpu.memory_space<vmem>>, vector<4x4xf32>
    %cst = arith.constant dense<0.000000e+00> : vector<4x136xf32>
    %5 = tpu.matmul %4, %1, %cst {dimension_numbers = #tpu.dot_dimension_numbers<[1], [0], [0], [1], [0, 0, 1, 1], [], []>} : vector<4x4xf32>, vector<4x136xf32>, vector<4x136xf32> -> vector<4x136xf32>
    %c0_7 = arith.constant 0 : index
    %c0_8 = arith.constant 0 : index
    %6 = vector.load %arg4[%c0_7, %c0_8] : memref<4x1xf32, #tpu.memory_space<vmem>>, vector<4x1xf32>
    %7 = vector.broadcast %6 : vector<4x1xf32> to vector<4x136xf32>
    %8 = arith.addf %5, %7 : vector<4x136xf32>
    %cst_9 = arith.constant 0.000000e+00 : f32
    %9 = vector.broadcast %cst_9 : f32 to vector<4x136xf32>
    %10 = arith.maximumf %8, %9 : vector<4x136xf32>
    %c0_10 = arith.constant 0 : index
    %c0_11 = arith.constant 0 : index
    %c0_12 = arith.constant 0 : index
    %11 = vector.load %arg5[%c0_10, %c0_11, %c0_12] : memref<3x4x4xf32, #tpu.memory_space<vmem>>, vector<1x4x4xf32>
    %12 = vector.shape_cast %11 : vector<1x4x4xf32> to vector<4x4xf32>
    %cst_13 = arith.constant dense<0.000000e+00> : vector<4x128xf32>
    %13 = tpu.matmul %12, %3, %cst_13 {dimension_numbers = #tpu.dot_dimension_numbers<[1], [0], [0], [1], [0, 0, 1, 1], [], []>} : vector<4x4xf32>, vector<4x128xf32>, vector<4x128xf32> -> vector<4x128xf32>
    %c0_14 = arith.constant 0 : index
    %c0_15 = arith.constant 0 : index
    %c0_16 = arith.constant 0 : index
    %14 = vector.load %arg6[%c0_14, %c0_15, %c0_16] : memref<3x4x1xf32, #tpu.memory_space<vmem>>, vector<1x4x1xf32>
    %15 = vector.shape_cast %14 : vector<1x4x1xf32> to vector<4x1xf32>
    %16 = vector.broadcast %15 : vector<4x1xf32> to vector<4x128xf32>
    %17 = arith.addf %13, %16 : vector<4x128xf32>
    %cst_17 = arith.constant 0.000000e+00 : f32
    %18 = vector.broadcast %cst_17 : f32 to vector<4x128xf32>
    %19 = arith.maximumf %17, %18 : vector<4x128xf32>
    %c1 = arith.constant 1 : index
    %c0_18 = arith.constant 0 : index
    %c0_19 = arith.constant 0 : index
    %20 = vector.load %arg5[%c1, %c0_18, %c0_19] : memref<3x4x4xf32, #tpu.memory_space<vmem>>, vector<1x4x4xf32>
    %21 = vector.shape_cast %20 : vector<1x4x4xf32> to vector<4x4xf32>
    %cst_20 = arith.constant dense<0.000000e+00> : vector<4x128xf32>
    %22 = tpu.matmul %21, %3, %cst_20 {dimension_numbers = #tpu.dot_dimension_numbers<[1], [0], [0], [1], [0, 0, 1, 1], [], []>} : vector<4x4xf32>, vector<4x128xf32>, vector<4x128xf32> -> vector<4x128xf32>
    %c1_21 = arith.constant 1 : index
    %c0_22 = arith.constant 0 : index
    %c0_23 = arith.constant 0 : index
    %23 = vector.load %arg6[%c1_21, %c0_22, %c0_23] : memref<3x4x1xf32, #tpu.memory_space<vmem>>, vector<1x4x1xf32>
    %24 = vector.shape_cast %23 : vector<1x4x1xf32> to vector<4x1xf32>
    %25 = vector.broadcast %24 : vector<4x1xf32> to vector<4x128xf32>
    %26 = arith.addf %22, %25 : vector<4x128xf32>
    %cst_24 = arith.constant 0.000000e+00 : f32
    %27 = vector.broadcast %cst_24 : f32 to vector<4x128xf32>
    %28 = arith.maximumf %26, %27 : vector<4x128xf32>
    %c2 = arith.constant 2 : index
    %c0_25 = arith.constant 0 : index
    %c0_26 = arith.constant 0 : index
    %29 = vector.load %arg5[%c2, %c0_25, %c0_26] : memref<3x4x4xf32, #tpu.memory_space<vmem>>, vector<1x4x4xf32>
    %30 = vector.shape_cast %29 : vector<1x4x4xf32> to vector<4x4xf32>
    %cst_27 = arith.constant dense<0.000000e+00> : vector<4x128xf32>
    %31 = tpu.matmul %30, %3, %cst_27 {dimension_numbers = #tpu.dot_dimension_numbers<[1], [0], [0], [1], [0, 0, 1, 1], [], []>} : vector<4x4xf32>, vector<4x128xf32>, vector<4x128xf32> -> vector<4x128xf32>
    %c2_28 = arith.constant 2 : index
    %c0_29 = arith.constant 0 : index
    %c0_30 = arith.constant 0 : index
    %32 = vector.load %arg6[%c2_28, %c0_29, %c0_30] : memref<3x4x1xf32, #tpu.memory_space<vmem>>, vector<1x4x1xf32>
    %33 = vector.shape_cast %32 : vector<1x4x1xf32> to vector<4x1xf32>
    %34 = vector.broadcast %33 : vector<4x1xf32> to vector<4x128xf32>
    %35 = arith.addf %31, %34 : vector<4x128xf32>
    %cst_31 = arith.constant 0.000000e+00 : f32
    %36 = vector.broadcast %cst_31 : f32 to vector<4x128xf32>
    %37 = arith.maximumf %35, %36 : vector<4x128xf32>
    %c0_32 = arith.constant 0 : index
    %c0_33 = arith.constant 0 : index
    %38 = vector.load %arg7[%c0_32, %c0_33] : memref<128x136xf32, #tpu.memory_space<vmem>>, vector<128x136xf32>
    %cst_34 = arith.constant dense<0.000000e+00> : vector<4x136xf32>
    %39 = tpu.matmul %19, %38, %cst_34 {dimension_numbers = #tpu.dot_dimension_numbers<[1], [0], [0], [1], [0, 0, 1, 1], [], []>} : vector<4x128xf32>, vector<128x136xf32>, vector<4x136xf32> -> vector<4x136xf32>
    %c0_35 = arith.constant 0 : index
    %c0_36 = arith.constant 0 : index
    %40 = vector.load %arg8[%c0_35, %c0_36] : memref<128x136xf32, #tpu.memory_space<vmem>>, vector<128x136xf32>
    %cst_37 = arith.constant dense<0.000000e+00> : vector<4x136xf32>
    %41 = tpu.matmul %37, %40, %cst_37 {dimension_numbers = #tpu.dot_dimension_numbers<[1], [0], [0], [1], [0, 0, 1, 1], [], []>} : vector<4x128xf32>, vector<128x136xf32>, vector<4x136xf32> -> vector<4x136xf32>
    %c0_38 = arith.constant 0 : index
    %c0_39 = arith.constant 0 : index
    %42 = vector.load %arg9[%c0_38, %c0_39] : memref<128x128xf32, #tpu.memory_space<vmem>>, vector<128x128xf32>
    %cst_40 = arith.constant dense<0.000000e+00> : vector<4x128xf32>
    %43 = tpu.matmul %19, %42, %cst_40 {dimension_numbers = #tpu.dot_dimension_numbers<[1], [0], [0], [1], [0, 0, 1, 1], [], []>} : vector<4x128xf32>, vector<128x128xf32>, vector<4x128xf32> -> vector<4x128xf32>
    %c0_41 = arith.constant 0 : index
    %c0_42 = arith.constant 0 : index
    %44 = vector.load %arg10[%c0_41, %c0_42] : memref<128x128xf32, #tpu.memory_space<vmem>>, vector<128x128xf32>
    %cst_43 = arith.constant dense<0.000000e+00> : vector<4x128xf32>
    %45 = tpu.matmul %37, %44, %cst_43 {dimension_numbers = #tpu.dot_dimension_numbers<[1], [0], [0], [1], [0, 0, 1, 1], [], []>} : vector<4x128xf32>, vector<128x128xf32>, vector<4x128xf32> -> vector<4x128xf32>
    %46 = arith.addf %39, %10 : vector<4x136xf32>
    %47 = arith.addf %46, %41 : vector<4x136xf32>
    %48 = arith.addf %43, %28 : vector<4x128xf32>
    %49 = arith.addf %48, %45 : vector<4x128xf32>
    %c0_44 = arith.constant 0 : index
    %c0_45 = arith.constant 0 : index
    %50 = vector.load %arg13[%c0_44, %c0_45] : memref<4x1xf32, #tpu.memory_space<vmem>>, vector<4x1xf32>
    %c0_46 = arith.constant 0 : index
    %c0_47 = arith.constant 0 : index
    %51 = vector.load %arg14[%c0_46, %c0_47] : memref<4x1xf32, #tpu.memory_space<vmem>>, vector<4x1xf32>
    %c0_48 = arith.constant 0 : index
    %c0_49 = arith.constant 0 : index
    %52 = vector.load %arg16[%c0_48, %c0_49] : memref<4x1xf32, #tpu.memory_space<vmem>>, vector<4x1xf32>
    %53 = vector.broadcast %50 : vector<4x1xf32> to vector<4x136xf32>
    %54 = arith.mulf %47, %53 : vector<4x136xf32>
    %55 = vector.broadcast %51 : vector<4x1xf32> to vector<4x136xf32>
    %56 = arith.addf %54, %55 : vector<4x136xf32>
    %cst_50 = arith.constant 0.000000e+00 : f32
    %57 = vector.broadcast %cst_50 : f32 to vector<4x136xf32>
    %58 = arith.maximumf %56, %57 : vector<4x136xf32>
    %59 = vector.broadcast %52 : vector<4x1xf32> to vector<4x136xf32>
    %60 = arith.addf %59, %1 : vector<4x136xf32>
    %c0_51 = arith.constant 0 : index
    %c0_52 = arith.constant 0 : index
    %c0_53 = arith.constant 0 : index
    %61 = vector.load %arg11[%c0_51, %c0_52, %c0_53] : memref<3x136x136xf32, #tpu.memory_space<vmem>>, vector<1x136x136xf32>
    %62 = vector.shape_cast %61 : vector<1x136x136xf32> to vector<136x136xf32>
    %cst_54 = arith.constant dense<0.000000e+00> : vector<4x136xf32>
    %63 = tpu.matmul %58, %62, %cst_54 {dimension_numbers = #tpu.dot_dimension_numbers<[1], [0], [0], [1], [0, 0, 1, 1], [], []>} : vector<4x136xf32>, vector<136x136xf32>, vector<4x136xf32> -> vector<4x136xf32>
    %c0_55 = arith.constant 0 : index
    %c0_56 = arith.constant 0 : index
    %c0_57 = arith.constant 0 : index
    %64 = vector.load %arg15[%c0_55, %c0_56, %c0_57] : memref<3x4x4xf32, #tpu.memory_space<vmem>>, vector<1x4x4xf32>
    %65 = vector.shape_cast %64 : vector<1x4x4xf32> to vector<4x4xf32>
    %cst_58 = arith.constant dense<0.000000e+00> : vector<4x136xf32>
    %66 = tpu.matmul %65, %63, %cst_58 {dimension_numbers = #tpu.dot_dimension_numbers<[1], [0], [0], [1], [0, 0, 1, 1], [], []>} : vector<4x4xf32>, vector<4x136xf32>, vector<4x136xf32> -> vector<4x136xf32>
    %67 = arith.addf %60, %66 : vector<4x136xf32>
    %c1_59 = arith.constant 1 : index
    %c0_60 = arith.constant 0 : index
    %c0_61 = arith.constant 0 : index
    %68 = vector.load %arg11[%c1_59, %c0_60, %c0_61] : memref<3x136x136xf32, #tpu.memory_space<vmem>>, vector<1x136x136xf32>
    %69 = vector.shape_cast %68 : vector<1x136x136xf32> to vector<136x136xf32>
    %cst_62 = arith.constant dense<0.000000e+00> : vector<4x136xf32>
    %70 = tpu.matmul %58, %69, %cst_62 {dimension_numbers = #tpu.dot_dimension_numbers<[1], [0], [0], [1], [0, 0, 1, 1], [], []>} : vector<4x136xf32>, vector<136x136xf32>, vector<4x136xf32> -> vector<4x136xf32>
    %c1_63 = arith.constant 1 : index
    %c0_64 = arith.constant 0 : index
    %c0_65 = arith.constant 0 : index
    %71 = vector.load %arg15[%c1_63, %c0_64, %c0_65] : memref<3x4x4xf32, #tpu.memory_space<vmem>>, vector<1x4x4xf32>
    %72 = vector.shape_cast %71 : vector<1x4x4xf32> to vector<4x4xf32>
    %cst_66 = arith.constant dense<0.000000e+00> : vector<4x136xf32>
    %73 = tpu.matmul %72, %70, %cst_66 {dimension_numbers = #tpu.dot_dimension_numbers<[1], [0], [0], [1], [0, 0, 1, 1], [], []>} : vector<4x4xf32>, vector<4x136xf32>, vector<4x136xf32> -> vector<4x136xf32>
    %74 = arith.addf %67, %73 : vector<4x136xf32>
    %c2_67 = arith.constant 2 : index
    %c0_68 = arith.constant 0 : index
    %c0_69 = arith.constant 0 : index
    %75 = vector.load %arg11[%c2_67, %c0_68, %c0_69] : memref<3x136x136xf32, #tpu.memory_space<vmem>>, vector<1x136x136xf32>
    %76 = vector.shape_cast %75 : vector<1x136x136xf32> to vector<136x136xf32>
    %cst_70 = arith.constant dense<0.000000e+00> : vector<4x136xf32>
    %77 = tpu.matmul %58, %76, %cst_70 {dimension_numbers = #tpu.dot_dimension_numbers<[1], [0], [0], [1], [0, 0, 1, 1], [], []>} : vector<4x136xf32>, vector<136x136xf32>, vector<4x136xf32> -> vector<4x136xf32>
    %c2_71 = arith.constant 2 : index
    %c0_72 = arith.constant 0 : index
    %c0_73 = arith.constant 0 : index
    %78 = vector.load %arg15[%c2_71, %c0_72, %c0_73] : memref<3x4x4xf32, #tpu.memory_space<vmem>>, vector<1x4x4xf32>
    %79 = vector.shape_cast %78 : vector<1x4x4xf32> to vector<4x4xf32>
    %cst_74 = arith.constant dense<0.000000e+00> : vector<4x136xf32>
    %80 = tpu.matmul %79, %77, %cst_74 {dimension_numbers = #tpu.dot_dimension_numbers<[1], [0], [0], [1], [0, 0, 1, 1], [], []>} : vector<4x4xf32>, vector<4x136xf32>, vector<4x136xf32> -> vector<4x136xf32>
    %81 = arith.addf %74, %80 : vector<4x136xf32>
    %cst_75 = arith.constant 0.000000e+00 : f32
    %82 = vector.broadcast %cst_75 : f32 to vector<4x136xf32>
    %83 = arith.maximumf %81, %82 : vector<4x136xf32>
    %c0_76 = arith.constant 0 : index
    %c0_77 = arith.constant 0 : index
    %c0_78 = arith.constant 0 : index
    %84 = vector.load %arg21[%c0_76, %c0_77, %c0_78] : memref<1x4x136xf32, #tpu.memory_space<vmem>>, vector<1x4x136xf32>
    %85 = vector.shape_cast %84 : vector<1x4x136xf32> to vector<4x136xf32>
    %86 = vector.shape_cast %83 : vector<4x136xf32> to vector<1x4x136xf32>
    tpu.vector_store %arg21[%c0_76, %c0_77, %c0_78], %86 {strides = array<i32>} : memref<1x4x136xf32, #tpu.memory_space<vmem>>, vector<1x4x136xf32>,
    %c0_79 = arith.constant 0 : index
    %c0_80 = arith.constant 0 : index
    %87 = vector.load %arg17[%c0_79, %c0_80] : memref<4x1xf32, #tpu.memory_space<vmem>>, vector<4x1xf32>
    %c0_81 = arith.constant 0 : index
    %c0_82 = arith.constant 0 : index
    %88 = vector.load %arg18[%c0_81, %c0_82] : memref<4x1xf32, #tpu.memory_space<vmem>>, vector<4x1xf32>
    %c0_83 = arith.constant 0 : index
    %c0_84 = arith.constant 0 : index
    %89 = vector.load %arg20[%c0_83, %c0_84] : memref<4x1xf32, #tpu.memory_space<vmem>>, vector<4x1xf32>
    %90 = vector.broadcast %87 : vector<4x1xf32> to vector<4x128xf32>
    %91 = arith.mulf %49, %90 : vector<4x128xf32>
    %92 = vector.broadcast %88 : vector<4x1xf32> to vector<4x128xf32>
    %93 = arith.addf %91, %92 : vector<4x128xf32>
    %cst_85 = arith.constant 0.000000e+00 : f32
    %94 = vector.broadcast %cst_85 : f32 to vector<4x128xf32>
    %95 = arith.maximumf %93, %94 : vector<4x128xf32>
    %96 = vector.broadcast %89 : vector<4x1xf32> to vector<4x128xf32>
    %97 = arith.addf %96, %3 : vector<4x128xf32>
    %c0_86 = arith.constant 0 : index
    %c0_87 = arith.constant 0 : index
    %c0_88 = arith.constant 0 : index
    %98 = vector.load %arg12[%c0_86, %c0_87, %c0_88] : memref<3x128x128xf32, #tpu.memory_space<vmem>>, vector<1x128x128xf32>
    %99 = vector.shape_cast %98 : vector<1x128x128xf32> to vector<128x128xf32>
    %cst_89 = arith.constant dense<0.000000e+00> : vector<4x128xf32>
    %100 = tpu.matmul %95, %99, %cst_89 {dimension_numbers = #tpu.dot_dimension_numbers<[1], [0], [0], [1], [0, 0, 1, 1], [], []>} : vector<4x128xf32>, vector<128x128xf32>, vector<4x128xf32> -> vector<4x128xf32>
    %c0_90 = arith.constant 0 : index
    %c0_91 = arith.constant 0 : index
    %c0_92 = arith.constant 0 : index
    %101 = vector.load %arg19[%c0_90, %c0_91, %c0_92] : memref<3x4x4xf32, #tpu.memory_space<vmem>>, vector<1x4x4xf32>
    %102 = vector.shape_cast %101 : vector<1x4x4xf32> to vector<4x4xf32>
    %cst_93 = arith.constant dense<0.000000e+00> : vector<4x128xf32>
    %103 = tpu.matmul %102, %100, %cst_93 {dimension_numbers = #tpu.dot_dimension_numbers<[1], [0], [0], [1], [0, 0, 1, 1], [], []>} : vector<4x4xf32>, vector<4x128xf32>, vector<4x128xf32> -> vector<4x128xf32>
    %104 = arith.addf %97, %103 : vector<4x128xf32>
    %c1_94 = arith.constant 1 : index
    %c0_95 = arith.constant 0 : index
    %c0_96 = arith.constant 0 : index
    %105 = vector.load %arg12[%c1_94, %c0_95, %c0_96] : memref<3x128x128xf32, #tpu.memory_space<vmem>>, vector<1x128x128xf32>
    %106 = vector.shape_cast %105 : vector<1x128x128xf32> to vector<128x128xf32>
    %cst_97 = arith.constant dense<0.000000e+00> : vector<4x128xf32>
    %107 = tpu.matmul %95, %106, %cst_97 {dimension_numbers = #tpu.dot_dimension_numbers<[1], [0], [0], [1], [0, 0, 1, 1], [], []>} : vector<4x128xf32>, vector<128x128xf32>, vector<4x128xf32> -> vector<4x128xf32>
    %c1_98 = arith.constant 1 : index
    %c0_99 = arith.constant 0 : index
    %c0_100 = arith.constant 0 : index
    %108 = vector.load %arg19[%c1_98, %c0_99, %c0_100] : memref<3x4x4xf32, #tpu.memory_space<vmem>>, vector<1x4x4xf32>
    %109 = vector.shape_cast %108 : vector<1x4x4xf32> to vector<4x4xf32>
    %cst_101 = arith.constant dense<0.000000e+00> : vector<4x128xf32>
    %110 = tpu.matmul %109, %107, %cst_101 {dimension_numbers = #tpu.dot_dimension_numbers<[1], [0], [0], [1], [0, 0, 1, 1], [], []>} : vector<4x4xf32>, vector<4x128xf32>, vector<4x128xf32> -> vector<4x128xf32>
    %111 = arith.addf %104, %110 : vector<4x128xf32>
    %c2_102 = arith.constant 2 : index
    %c0_103 = arith.constant 0 : index
    %c0_104 = arith.constant 0 : index
    %112 = vector.load %arg12[%c2_102, %c0_103, %c0_104] : memref<3x128x128xf32, #tpu.memory_space<vmem>>, vector<1x128x128xf32>
    %113 = vector.shape_cast %112 : vector<1x128x128xf32> to vector<128x128xf32>
    %cst_105 = arith.constant dense<0.000000e+00> : vector<4x128xf32>
    %114 = tpu.matmul %95, %113, %cst_105 {dimension_numbers = #tpu.dot_dimension_numbers<[1], [0], [0], [1], [0, 0, 1, 1], [], []>} : vector<4x128xf32>, vector<128x128xf32>, vector<4x128xf32> -> vector<4x128xf32>
    %c2_106 = arith.constant 2 : index
    %c0_107 = arith.constant 0 : index
    %c0_108 = arith.constant 0 : index
    %115 = vector.load %arg19[%c2_106, %c0_107, %c0_108] : memref<3x4x4xf32, #tpu.memory_space<vmem>>, vector<1x4x4xf32>
    %116 = vector.shape_cast %115 : vector<1x4x4xf32> to vector<4x4xf32>
    %cst_109 = arith.constant dense<0.000000e+00> : vector<4x128xf32>
    %117 = tpu.matmul %116, %114, %cst_109 {dimension_numbers = #tpu.dot_dimension_numbers<[1], [0], [0], [1], [0, 0, 1, 1], [], []>} : vector<4x4xf32>, vector<4x128xf32>, vector<4x128xf32> -> vector<4x128xf32>
    %118 = arith.addf %111, %117 : vector<4x128xf32>
    %cst_110 = arith.constant 0.000000e+00 : f32
    %119 = vector.broadcast %cst_110 : f32 to vector<4x128xf32>
    %120 = arith.maximumf %118, %119 : vector<4x128xf32>
    %c0_111 = arith.constant 0 : index
    %c0_112 = arith.constant 0 : index
    %c0_113 = arith.constant 0 : index
    %121 = vector.load %arg22[%c0_111, %c0_112, %c0_113] : memref<1x4x128xf32, #tpu.memory_space<vmem>>, vector<1x4x128xf32>
    %122 = vector.shape_cast %121 : vector<1x4x128xf32> to vector<4x128xf32>
    %123 = vector.shape_cast %120 : vector<4x128xf32> to vector<1x4x128xf32>
    tpu.vector_store %arg22[%c0_111, %c0_112, %c0_113], %123 {strides = array<i32>} : memref<1x4x128xf32, #tpu.memory_space<vmem>>, vector<1x4x128xf32>,
    return
  }
  func.func @transform_0(%arg0: i32) -> (i32, i32, i32) {
    %c0_i32 = arith.constant 0 : i32
    %c0_i32_0 = arith.constant 0 : i32
    %c0_i32_1 = arith.constant 0 : i32
    return %arg0, %c0_i32, %c0_i32_0 : i32, i32, i32
  }
  func.func @transform_1(%arg0: i32) -> (i32, i32, i32) {
    %c0_i32 = arith.constant 0 : i32
    %c0_i32_0 = arith.constant 0 : i32
    %c0_i32_1 = arith.constant 0 : i32
    return %arg0, %c0_i32, %c0_i32_0 : i32, i32, i32
  }
  func.func @transform_2(%arg0: i32) -> (i32, i32) {
    %c0_i32 = arith.constant 0 : i32
    %c0_i32_0 = arith.constant 0 : i32
    %c0_i32_1 = arith.constant 0 : i32
    return %c0_i32, %c0_i32_0 : i32, i32
  }
  func.func @transform_3(%arg0: i32) -> (i32, i32) {
    %c0_i32 = arith.constant 0 : i32
    %c0_i32_0 = arith.constant 0 : i32
    %c0_i32_1 = arith.constant 0 : i32
    return %c0_i32, %c0_i32_0 : i32, i32
  }
  func.func @transform_4(%arg0: i32) -> (i32, i32, i32) {
    %c0_i32 = arith.constant 0 : i32
    %c0_i32_0 = arith.constant 0 : i32
    %c0_i32_1 = arith.constant 0 : i32
    %c0_i32_2 = arith.constant 0 : i32
    return %c0_i32, %c0_i32_0, %c0_i32_1 : i32, i32, i32
  }
  func.func @transform_5(%arg0: i32) -> (i32, i32, i32) {
    %c0_i32 = arith.constant 0 : i32
    %c0_i32_0 = arith.constant 0 : i32
    %c0_i32_1 = arith.constant 0 : i32
    %c0_i32_2 = arith.constant 0 : i32
    return %c0_i32, %c0_i32_0, %c0_i32_1 : i32, i32, i32
  }
  func.func @transform_6(%arg0: i32) -> (i32, i32) {
    %c0_i32 = arith.constant 0 : i32
    %c0_i32_0 = arith.constant 0 : i32
    %c0_i32_1 = arith.constant 0 : i32
    return %c0_i32, %c0_i32_0 : i32, i32
  }
  func.func @transform_7(%arg0: i32) -> (i32, i32) {
    %c0_i32 = arith.constant 0 : i32
    %c0_i32_0 = arith.constant 0 : i32
    %c0_i32_1 = arith.constant 0 : i32
    return %c0_i32, %c0_i32_0 : i32, i32
  }
  func.func @transform_8(%arg0: i32) -> (i32, i32) {
    %c0_i32 = arith.constant 0 : i32
    %c0_i32_0 = arith.constant 0 : i32
    %c0_i32_1 = arith.constant 0 : i32
    return %c0_i32, %c0_i32_0 : i32, i32
  }
  func.func @transform_9(%arg0: i32) -> (i32, i32) {
    %c0_i32 = arith.constant 0 : i32
    %c0_i32_0 = arith.constant 0 : i32
    %c0_i32_1 = arith.constant 0 : i32
    return %c0_i32, %c0_i32_0 : i32, i32
  }
  func.func @transform_10(%arg0: i32) -> (i32, i32, i32) {
    %c0_i32 = arith.constant 0 : i32
    %c0_i32_0 = arith.constant 0 : i32
    %c0_i32_1 = arith.constant 0 : i32
    %c0_i32_2 = arith.constant 0 : i32
    return %c0_i32, %c0_i32_0, %c0_i32_1 : i32, i32, i32
  }
  func.func @transform_11(%arg0: i32) -> (i32, i32, i32) {
    %c0_i32 = arith.constant 0 : i32
    %c0_i32_0 = arith.constant 0 : i32
    %c0_i32_1 = arith.constant 0 : i32
    %c0_i32_2 = arith.constant 0 : i32
    return %c0_i32, %c0_i32_0, %c0_i32_1 : i32, i32, i32
  }
  func.func @transform_12(%arg0: i32) -> (i32, i32) {
    %c0_i32 = arith.constant 0 : i32
    %c0_i32_0 = arith.constant 0 : i32
    %c0_i32_1 = arith.constant 0 : i32
    return %c0_i32, %c0_i32_0 : i32, i32
  }
  func.func @transform_13(%arg0: i32) -> (i32, i32) {
    %c0_i32 = arith.constant 0 : i32
    %c0_i32_0 = arith.constant 0 : i32
    %c0_i32_1 = arith.constant 0 : i32
    return %c0_i32, %c0_i32_0 : i32, i32
  }
  func.func @transform_14(%arg0: i32) -> (i32, i32, i32) {
    %c0_i32 = arith.constant 0 : i32
    %c0_i32_0 = arith.constant 0 : i32
    %c0_i32_1 = arith.constant 0 : i32
    %c0_i32_2 = arith.constant 0 : i32
    return %c0_i32, %c0_i32_0, %c0_i32_1 : i32, i32, i32
  }
  func.func @transform_15(%arg0: i32) -> (i32, i32) {
    %c0_i32 = arith.constant 0 : i32
    %c0_i32_0 = arith.constant 0 : i32
    %c0_i32_1 = arith.constant 0 : i32
    return %c0_i32, %c0_i32_0 : i32, i32
  }
  func.func @transform_16(%arg0: i32) -> (i32, i32) {
    %c0_i32 = arith.constant 0 : i32
    %c0_i32_0 = arith.constant 0 : i32
    %c0_i32_1 = arith.constant 0 : i32
    return %c0_i32, %c0_i32_0 : i32, i32
  }
  func.func @transform_17(%arg0: i32) -> (i32, i32) {
    %c0_i32 = arith.constant 0 : i32
    %c0_i32_0 = arith.constant 0 : i32
    %c0_i32_1 = arith.constant 0 : i32
    return %c0_i32, %c0_i32_0 : i32, i32
  }
  func.func @transform_18(%arg0: i32) -> (i32, i32, i32) {
    %c0_i32 = arith.constant 0 : i32
    %c0_i32_0 = arith.constant 0 : i32
    %c0_i32_1 = arith.constant 0 : i32
    %c0_i32_2 = arith.constant 0 : i32
    return %c0_i32, %c0_i32_0, %c0_i32_1 : i32, i32, i32
  }
  func.func @transform_19(%arg0: i32) -> (i32, i32) {
    %c0_i32 = arith.constant 0 : i32
    %c0_i32_0 = arith.constant 0 : i32
    %c0_i32_1 = arith.constant 0 : i32
    return %c0_i32, %c0_i32_0 : i32, i32
  }
  func.func @transform_20(%arg0: i32) -> (i32, i32, i32) {
    %c0_i32 = arith.constant 0 : i32
    %c0_i32_0 = arith.constant 0 : i32
    %c0_i32_1 = arith.constant 0 : i32
    return %arg0, %c0_i32, %c0_i32_0 : i32, i32, i32
  }
  func.func @transform_21(%arg0: i32) -> (i32, i32, i32) {
    %c0_i32 = arith.constant 0 : i32
    %c0_i32_0 = arith.constant 0 : i32
    %c0_i32_1 = arith.constant 0 : i32
    return %arg0, %c0_i32, %c0_i32_0 : i32, i32, i32
  }
}

</mosaic_0001>

<bundles_post_ra>
// kernel: forward.1
= control target key start
LH: loop header
LB: loop body
LE: loop exit
PB: predicated region body
PF: predicated region fallthrough
CT: control target
= control target key end

     0   :  { %s4217_s0 = inlined_call_operand.vmem [shape: f32[2,4,136], index: 0, kind: input, shape index: {}]   ;;  %s4218_s1 = inlined_call_operand.vmem [shape: f32[2,4,128], index: 1, kind: input, shape index: {}]   ;;  %s4219_s2 = inlined_call_operand.vmem [shape: f32[4,4], index: 2, kind: input, shape index: {}]   ;;  %s4220_s3 = inlined_call_operand.vmem [shape: f32[4,1], index: 3, kind: input, shape index: {}]   ;;  %s4221_s4 = inlined_call_operand.vmem [shape: f32[3,4,4], index: 4, kind: input, shape index: {}]   ;;  %s4222_s5 = inlined_call_operand.vmem [shape: f32[3,4,1], index: 5, kind: input, shape index: {}]   ;;  %s4223_s6 = inlined_call_operand.vmem [shape: f32[128,136], index: 6, kind: input, shape index: {}]   ;;  %s4224_s7 = inlined_call_operand.vmem [shape: f32[128,136], index: 7, kind: input, shape index: {}]   ;;  %s4225_s8 = inlined_call_operand.vmem [shape: f32[128,128], index: 8, kind: input, shape index: {}]   ;;  %s4226_s9 = inlined_call_operand.hbm [shape: f32[128,128], index: 9, kind: input, shape index: {}]   ;;  %s4227_s10 = inlined_call_operand.vmem [shape: f32[3,136,136], index: 10, kind: input, shape index: {}]   ;;  %s4228_s11 = inlined_call_operand.hbm [shape: f32[3,128,128], index: 11, kind: input, shape index: {}]   ;;  %s4229_s12 = inlined_call_operand.vmem [shape: f32[4,1], index: 12, kind: input, shape index: {}]   ;;  %s4230_s13 = inlined_call_operand.vmem [shape: f32[4,1], index: 13, kind: input, shape index: {}]   ;;  %s4231_s14 = inlined_call_operand.vmem [shape: f32[3,4,4], index: 14, kind: input, shape index: {}]   ;;  %s4232_s15 = inlined_call_operand.vmem [shape: f32[4,1], index: 15, kind: input, shape index: {}]   ;;  %s4233_s16 = inlined_call_operand.vmem [shape: f32[4,1], index: 16, kind: input, shape index: {}]   ;;  %s4234_s17 = inlined_call_operand.vmem [shape: f32[4,1], index: 17, kind: input, shape index: {}]   ;;  %s4235_s18 = inlined_call_operand.vmem [shape: f32[3,4,4], index: 18, kind: input, shape index: {}]   ;;  %s4236_s19 = inlined_call_operand.vmem [shape: f32[4,1], index: 19, kind: input, shape index: {}]   ;;  %s4237_s20 = inlined_call_operand.vmem [shape: f32[2,4,136], index: 20, kind: output, shape index: {0}]   ;;  %s4238_s21 = inlined_call_operand.vmem [shape: f32[2,4,128], index: 21, kind: output, shape index: {1}]  }
   0x1   :  { %4243 = sst [smem:[#allocation8_spill]] %s4217_s0 }
   0x2   :  { %4244 = sst [smem:[#allocation9_spill]] %s4218_s1 }
   0x3   :  { %4245 = sst [smem:[#allocation10_spill]] %s4219_s2 }
   0x4   :  { %4246 = sst [smem:[#allocation11_spill]] %s4220_s3 }
   0x5   :  { %4247 = sst [smem:[#allocation12_spill]] %s4221_s4 }
   0x6   :  { %4248 = sst [smem:[#allocation13_spill]] %s4222_s5 }
   0x7   :  { %4249 = sst [smem:[#allocation14_spill]] %s4224_s7 }
   0x8   :  { %4250 = sst [smem:[#allocation15_spill]] %s4226_s9 }
   0x9   :  { %27 = vsyncpa [#allocation3], 0 }
   0xa   :  { %28 = vsyncpa [#allocation5], 0  ;;  %s3335_s2 = smov 0  }
   0xb LB: > { %s3341_s25 = sadd.s32 4294967295, %s3216_s2   ;;  %p2689_p0 = scmp.ge.s32.totalorder %s3216_s2, 1  ;;  %s3216_s2 = sphi %s3335_s2, %s34_s2  }
   0xc   : > { %p521_p1 = scmp.lt.s32.totalorder %s3216_s2, 3  ;;  %s3218_s26 = smov [#allocation2]  }
   0xd   : > { %s554_s27 = sshll.u32 %s3218_s26, 4  ;;  %p3126_p3 = scmp.eq.s32.totalorder %s3341_s25, 0  ;;  %s555_s27 = int_to_ptr.vmem [resolvable:$true] %s554_s27 }
   0xe   : > { %p3345_p2 = pnand %p2689_p0, %p521_p1  ;;  %s3219_s28 = smov [#allocation4]  }
   0xf   : > { %s570_s29 = sshll.u32 %s3219_s28, 4  ;;  %s3161_s4 = scalar_lea.vmem %s555_s27, 2048  ;;  %s571_s29 = int_to_ptr.vmem [resolvable:$true] %s570_s29 }
  0x10   : > { %p3119_p4 = pneg %p3345_p2  ;;  %p3162_p7 = scmp.ne.s32.totalorder %s555_s27, %s3161_s4 }
  0x11   : > { %p3169_p10 = scmp.lt.s32.totalorder %s555_s27, %s555_s27  ;;  %p3170_p11 = scmp.lt.s32.totalorder %s3161_s4, %s3161_s4 }
  0x12   : > { %p3354_p5 = pnand %p3126_p3, %p3119_p4 }
  0x13   : > { %p3171_p12 = por %p3170_p11, %p3169_p10 }
  0x14   : > { %p3152_p6 = pneg %p3354_p5 }
  0x16   : > { %p3164_p8 = pnand %p3162_p7, %p3152_p6 }
  0x18   : > { %p3165_p9 = pneg %p3164_p8 }
  0x1a   : > { %p3172_p13 = pnand %p3171_p12, %p3165_p9 }
  0x1c   : > { %3175 = shalt.err (!%p3172_p13)
}
  0x1d   : > { %s3220_s30 = smov 128   ;;  %s3221_s5 = smov 8  }
  0x1e   : > { %s4253_s9 = sld [smem:[#allocation15_spill]]  ;;  %s3187_s1 = scalar_lea.vmem %s571_s29, 6144 }
  0x1f   : > { %p3188_p0 = scmp.ne.s32.totalorder %s571_s29, %s3187_s1  ;;  %p3195_p7 = scmp.lt.s32.totalorder %s571_s29, %s571_s29 }
  0x20   : > { %p3196_p8 = scmp.lt.s32.totalorder %s3187_s1, %s3187_s1 }
  0x21   : > { %p3190_p1 = pnand %p3188_p0, %p3152_p6 }
  0x22   : > { %p3197_p10 = por %p3196_p8, %p3195_p7 }
  0x23   : > { %p3191_p4 = pneg %p3190_p1 }
  0x24   : > { %3122 = dma.hbm_to_vmem [thread:$0]  (!%p3354_p5), %s4253_s9, 2048, %s555_s27, [#allocation3], %s3220_s30, %s3220_s30, %s3221_s5  }
  0x25   : > { %p3198_p9 = pnand %p3197_p10, %p3191_p4 }
  0x27   : > { %3201 = shalt.err (!%p3198_p9)
}
  0x28   : > { %3125 = dma.hbm_to_vmem [thread:$0]  (!%p3354_p5), %s4228_s11, 6144, %s571_s29, [#allocation5], %s3220_s30, %s3220_s30, %s3221_s5  }
  0x29   : > { %625 = sbr.rel (%p3345_p2) target bundleno = 1841 (0x731), region = 100 }
  0x2e   : > { %3207 = dma.done.wait (%p3126_p3), [#allocation3], 2048  }
  0x2f   : > { %3209 = vsyncadd (%p3126_p3), [#allocation3], 4294965248 }
  0x30   : > { %3211 = dma.done.wait (%p3126_p3), [#allocation5], 6144  }
  0x31   : > { %3213 = vsyncadd (%p3126_p3), [#allocation5], 4294961152  ;;  %p697_p6 = scmp.lt.s32.totalorder %s3341_s25, 1  ;;  %v3222_v0 = vmov 0.0   ;;  %vm3223_vm0 = vmmov 0   ;;  %v3224_v1 = vmov 0  }
  0x32   : > { %2906 = vmatprep.subr.mxu1 %v3222_v0  ;;  %2908 = vmatprep.mubr.msk.f32.mxu1 %vm3223_vm0, %v3222_v0  ;;  %s4254_s0 = sld [smem:[#allocation9_spill]]  ;;  %vm730_vm1 = vcmask 1043456   ;;  %vm726_vm2 = vcmask 31744   ;;  %v1224_v11 = vld [vmem:[#allocation2 + $0x78] sm:$0xff]  ;;  %v1440_v13 = vld [vmem:[%s4230_s13] sm:$0xf] }
  0x33   : > { %s4264_s25 = smov (!%p697_p6, %s3341_s25), 1  ;;  %3145 = vset.pattern.permute.xlu0 %v3224_v1  ;;  %799 = vmatprep.mubr.f32.mxu0 %v3222_v0  ;;  %s4255_s22 = sld [smem:[#allocation8_spill]]  ;;  %v1223_v16 = vld [vmem:[#allocation2 + $0x70] sm:$0xff]  ;;  %v1222_v19 = vld [vmem:[#allocation2 + $0x68] sm:$0xff]  ;;  %v2047_v20 = vld [vmem:[%s4233_s16] sm:$0xf] }
  0x34   : > { %3146 = vset.pattern.permute.xlu1 %v3224_v1  ;;  %s4241_s27 = sshll.u32 %s4264_s25, 2  ;;  %s4242_s3 = sshll.u32 %s4264_s25, 3  ;;  %v1221_v24 = vld [vmem:[#allocation2 + $0x60] sm:$0xff]  ;;  %v1220_v28 = vld [vmem:[#allocation2 + $0x58] sm:$0xff]  ;;  %v1219_v31 = vld [vmem:[#allocation2 + $0x50] sm:$0xff]  ;;  %vm1500_vm3 = vcmask 64512  }
  0x35   : > { %s4256_s26 = sld [smem:[#allocation12_spill]]  ;;  %v1441_v26 = vld [vmem:[%s4232_s15] sm:$0xf]  ;;  %v1218_v34 = vld [vmem:[#allocation2 + $0x48] sm:$0xff]  ;;  %v1216_v40 = vld [vmem:[#allocation2 + $0x38] sm:$0xff]  ;;  %vm2044_vm4 = vcmask 64516  }
  0x36   : > { %s4258_s24 = sld [smem:[#allocation10_spill]]  ;;  %v1217_v37 = vld [vmem:[#allocation2 + $0x40] sm:$0xff]  ;;  %v1215_v43 = vld [vmem:[#allocation2 + $0x30] sm:$0xff]  ;;  %v1214_v46 = vld [vmem:[#allocation2 + $0x28] sm:$0xff]  ;;  %s4262_s9 = sshll.u32 %s4264_s25, 2 }
  0x37   : > { %s4259_s7 = sld [smem:[#allocation14_spill]]  ;;  %v1213_v49 = vld [vmem:[#allocation2 + $0x20] sm:$0xff]  ;;  %v1212_v52 = vld [vmem:[#allocation2 + $0x18] sm:$0xff]  ;;  %v1211_v55 = vld [vmem:[#allocation2 + $0x10] sm:$0xff] }
  0x38   : > { %s3401_s4 = scalar_lea.vmem %s4254_s0, %s4241_s27  ;;  %s4257_s0 = sld [smem:[#allocation13_spill]]  ;;  %v1210_v58 = vld [vmem:[#allocation2 + $0x8] sm:$0xff]  ;;  %v1209_v61 = vld [vmem:[#allocation2] sm:$0xff]  ;;  %v1089_v62 = vld [vmem:[%s4223_s6 + $0xf8] sm:$0xff] }
  0x39   : > { %s3408_s23 = scalar_lea.vmem %s4255_s22, %s4242_s3  ;;  %v716_v2 = vld [vmem:[%s3401_s4] sm:$0xf]  ;;  %vm2045_vm5 = vmor %vm2044_vm4, %vm730_vm1 }
  0x3a   : > { %2907 = vmatpush3.msk.msra.mxu1 %vm730_vm1, %v716_v2  ;;  %v715_v5 = vld [vmem:[%s3408_s23] sm:$0xff] }
  0x3b   : > { %v808_v3 = vld [vmem:[%s4256_s26] sm:$0xf]  ;;  %2916 = vmatprep.subr.mxu1 %v3222_v0  ;;  %v2711_v6 = vld [vmem:[%s4256_s26 + $0x8] sm:$0xf]  ;;  %v3427_v7 = vcombine.high %v715_v5, %v715_v5  ;;  %v2707_v12 = vld [vmem:[%s4256_s26 + $0x4] sm:$0xf] }
  0x3c   : > { %2909 = vmatmul.mubr.msk.f32.vlgmr.msra.gmra.mxu1 %vm726_vm2, %v808_v3  ;;  %v717_v8 = vld [vmem:[%s4258_s24] sm:$0xf]  ;;  %s4260_s24 = sld [smem:[#allocation11_spill]] }
  0x3d   : > { %2917 = vmatpush3.msk.msra.mxu1 %vm730_vm1, %v716_v2  ;;  %2918 = vmatprep.mubr.msk.f32.mxu1 %vm3223_vm0, %v3222_v0  ;;  %v1121_v10 = vld [vmem:[%s4259_s7 + $0xf8] sm:$0xff]  ;;  %v1120_v14 = vld [vmem:[%s4259_s7 + $0xf0] sm:$0xff]  ;;  %v1119_v15 = vld [vmem:[%s4259_s7 + $0xe8] sm:$0xff] }
  0x3e   : > { %v2712_v4 = vld [vmem:[%s4257_s0 + $0x8] sm:$0xf]  ;;  %2921 = vmatprep.subr.mxu1 %v3222_v0  ;;  %v809_v9 = vld [vmem:[%s4257_s0] sm:$0xf]  ;;  %2702 = vmatprep.subr.msk.mxu0 %vm730_vm1, %v3427_v7  ;;  %v1117_v18 = vld [vmem:[%s4259_s7 + $0xd8] sm:$0xff] }
  0x3f   : > { %981 = vperm.xlu0 %3145, %v2712_v4   ;;  %2703 = vmatpush1.msk.msra.mxu0 %vm730_vm1, %v715_v5  ;;  %v1118_v17 = vld [vmem:[%s4259_s7 + $0xe0] sm:$0xff]  ;;  %v1116_v21 = vld [vmem:[%s4259_s7 + $0xd0] sm:$0xff]  ;;  %v1115_v22 = vld [vmem:[%s4259_s7 + $0xc8] sm:$0xff] }
  0x40   : > { %2919 = vmatmul.mubr.msk.f32.vlgmr.msra.gmra.mxu1 %vm726_vm2, %v2711_v6  ;;  %2704 = vmatmul.mubr.msk.f32.vlgmr.msra.gmra.mxu0 %vm726_vm2, %v717_v8  ;;  %v1114_v23 = vld [vmem:[%s4259_s7 + $0xc0] sm:$0xff]  ;;  %v1113_v25 = vld [vmem:[%s4259_s7 + $0xb8] sm:$0xff]  ;;  %v1112_v27 = vld [vmem:[%s4259_s7 + $0xb0] sm:$0xff] }
  0x41   : > { %2911 = vmatprep.subr.mxu0 %v3222_v0  ;;  %2913 = vmatprep.mubr.msk.f32.mxu0 %vm3223_vm0, %v3222_v0  ;;  %v1111_v29 = vld [vmem:[%s4259_s7 + $0xa8] sm:$0xff]  ;;  %v1110_v30 = vld [vmem:[%s4259_s7 + $0xa0] sm:$0xff]  ;;  %v1109_v32 = vld [vmem:[%s4259_s7 + $0x98] sm:$0xff] }
  0x42   : > { %2912 = vmatpush3.msk.msra.mxu0 %vm730_vm1, %v716_v2  ;;  %2922 = vmatpush3.msra.mxu1 %v1224_v11  ;;  %v1108_v33 = vld [vmem:[%s4259_s7 + $0x90] sm:$0xff]  ;;  %v1107_v35 = vld [vmem:[%s4259_s7 + $0x88] sm:$0xff]  ;;  %v1106_v36 = vld [vmem:[%s4259_s7 + $0x80] sm:$0xff] }
  0x43   : > { %812 = vperm.xlu0 %3145, %v809_v9   ;;  %1122 = vmatprep.subr.mxu0 %v1121_v10  ;;  %v1105_v38 = vld [vmem:[%s4259_s7 + $0x78] sm:$0xff]  ;;  %v1104_v39 = vld [vmem:[%s4259_s7 + $0x70] sm:$0xff]  ;;  %v1103_v41 = vld [vmem:[%s4259_s7 + $0x68] sm:$0xff] }
  0x44   : > { %2953 = vmatprep.mubr.msk.f32.mxu1 %vm3223_vm0, %v3222_v0  ;;  %2914 = vmatmul.mubr.msk.f32.vlgmr.msra.gmra.mxu0 %vm726_vm2, %v2707_v12  ;;  %v1102_v42 = vld [vmem:[%s4259_s7 + $0x60] sm:$0xff]  ;;  %v1101_v44 = vld [vmem:[%s4259_s7 + $0x58] sm:$0xff]  ;;  %v1100_v45 = vld [vmem:[%s4259_s7 + $0x50] sm:$0xff] }
  0x45   : > { %2923 = vmatprep.subr.mxu1 %v3222_v0  ;;  %1123 = vmatpush1.msra.mxu0 %v1120_v14  ;;  %v1099_v47 = vld [vmem:[%s4259_s7 + $0x48] sm:$0xff]  ;;  %v1098_v48 = vld [vmem:[%s4259_s7 + $0x40] sm:$0xff]  ;;  %v1097_v50 = vld [vmem:[%s4259_s7 + $0x38] sm:$0xff] }
  0x46   : > { %1124 = vmatprep.subr.mxu0 %v1119_v15  ;;  %2924 = vmatpush3.msra.mxu1 %v1223_v16  ;;  %v1096_v51 = vld [vmem:[%s4259_s7 + $0x30] sm:$0xff]  ;;  %v1095_v53 = vld [vmem:[%s4259_s7 + $0x28] sm:$0xff]  ;;  %v1094_v54 = vld [vmem:[%s4259_s7 + $0x20] sm:$0xff] }
  0x47   : > { %1451 = vperm.xlu0 %3145, %v1440_v13   ;;  %1125 = vmatpush1.msra.mxu0 %v1118_v17  ;;  %v1093_v56 = vld [vmem:[%s4259_s7 + $0x18] sm:$0xff]  ;;  %v1092_v57 = vld [vmem:[%s4259_s7 + $0x10] sm:$0xff]  ;;  %v1091_v59 = vld [vmem:[%s4259_s7 + $0x8] sm:$0xff] }
  0x48   : > { %2925 = vmatprep.subr.mxu1 %v3222_v0  ;;  %1126 = vmatprep.subr.mxu0 %v1117_v18  ;;  %v1090_v60 = vld [vmem:[%s4259_s7] sm:$0xff]  ;;  %v1088_v14 = vld [vmem:[%s4223_s6 + $0xf0] sm:$0xff]  ;;  %v1208_v15 = vld [vmem:[%s4225_s8 + $0x78] sm:$0xff] }
  0x49   : > { %2926 = vmatpush3.msra.mxu1 %v1222_v19  ;;  %1127 = vmatpush1.msra.mxu0 %v1116_v21  ;;  %v718_v63 = vld [vmem:[%s4260_s24] sm:$0xf]  ;;  %v2708_v2 = vld [vmem:[%s4257_s0 + $0x4] sm:$0xf]  ;;  %v1087_v17 = vld [vmem:[%s4223_s6 + $0xe8] sm:$0xff] }
  0x4a   : > { %1128 = vmatprep.subr.mxu0 %v1115_v22  ;;  %2927 = vmatprep.subr.mxu1 %v3222_v0  ;;  %v1439_v1 = vld [vmem:[%s4229_s12] sm:$0xf]  ;;  %v1207_v19 = vld [vmem:[%s4225_s8 + $0x70] sm:$0xff]  ;;  %v1085_v21 = vld [vmem:[%s4223_s6 + $0xd8] sm:$0xff] }
  0x4b   : > { %2052 = vperm.xlu0 %3145, %v2047_v20   ;;  %1129 = vmatpush1.msra.mxu0 %v1114_v23  ;;  %v2048_v3 = vld [vmem:[%s4234_s17] sm:$0xf]  ;;  %v1084_v22 = vld [vmem:[%s4223_s6 + $0xd0] sm:$0xff]  ;;  %v1206_v23 = vld [vmem:[%s4225_s8 + $0x68] sm:$0xff] }
  0x4c   : > { %2928 = vmatpush3.msra.mxu1 %v1221_v24  ;;  %1130 = vmatprep.subr.mxu0 %v1113_v25  ;;  %v2049_v4 = vld [vmem:[%s4236_s19] sm:$0xf]  ;;  %v1083_v25 = vld [vmem:[%s4223_s6 + $0xc8] sm:$0xff] }
  0x4d   : > { %2929 = vmatprep.subr.mxu1 %v3222_v0  ;;  %1131 = vmatpush1.msra.mxu0 %v1112_v27  ;;  %v1086_v18 = vld [vmem:[%s4223_s6 + $0xe0] sm:$0xff] }
  0x4e   : > { %2930 = vmatpush3.msra.mxu1 %v1220_v28  ;;  %1132 = vmatprep.subr.mxu0 %v1111_v29  ;;  %v1205_v27 = vld [vmem:[%s4225_s8 + $0x60] sm:$0xff]  ;;  %v1081_v28 = vld [vmem:[%s4223_s6 + $0xb8] sm:$0xff]  ;;  %v1080_v29 = vld [vmem:[%s4223_s6 + $0xb0] sm:$0xff] }
  0x4f   : > { %1460 = vperm.xlu0 %3145, %v1441_v26   ;;  %2931 = vmatprep.subr.mxu1 %v3222_v0  ;;  %v1082_v26 = vld [vmem:[%s4223_s6 + $0xc0] sm:$0xff] }
  0x50   : > { %1133 = vmatpush1.msra.mxu0 %v1110_v30  ;;  %2932 = vmatpush3.msra.mxu1 %v1219_v31  ;;  %v1204_v30 = vld [vmem:[%s4225_s8 + $0x58] sm:$0xff]  ;;  %v1079_v31 = vld [vmem:[%s4223_s6 + $0xa8] sm:$0xff] }
  0x51   : > { %1134 = vmatprep.subr.mxu0 %v1109_v32  ;;  %2933 = vmatprep.subr.mxu1 %v3222_v0  ;;  %v1078_v32 = vld [vmem:[%s4223_s6 + $0xa0] sm:$0xff] }
  0x52   : > { %1135 = vmatpush1.msra.mxu0 %v1108_v33  ;;  %2934 = vmatpush3.msra.mxu1 %v1218_v34  ;;  %v1203_v33 = vld [vmem:[%s4225_s8 + $0x50] sm:$0xff]  ;;  %v1077_v34 = vld [vmem:[%s4223_s6 + $0x98] sm:$0xff] }
  0x53   : > { %1136 = vmatprep.subr.mxu0 %v1107_v35  ;;  %2935 = vmatprep.subr.mxu1 %v3222_v0  ;;  %v1076_v35 = vld [vmem:[%s4223_s6 + $0x90] sm:$0xff] }
  0x54   : > { %1137 = vmatpush1.msra.mxu0 %v1106_v36  ;;  %2936 = vmatpush3.msra.mxu1 %v1217_v37  ;;  %v1202_v36 = vld [vmem:[%s4225_s8 + $0x48] sm:$0xff] }
  0x55   : > { %1138 = vmatprep.subr.mxu0 %v1105_v38  ;;  %2937 = vmatprep.subr.mxu1 %v3222_v0  ;;  %v1075_v37 = vld [vmem:[%s4223_s6 + $0x88] sm:$0xff]  ;;  %v1074_v38 = vld [vmem:[%s4223_s6 + $0x80] sm:$0xff] }
  0x56   : > { %1139 = vmatpush1.msra.mxu0 %v1104_v39  ;;  %2938 = vmatpush3.msra.mxu1 %v1216_v40  ;;  %v1201_v39 = vld [vmem:[%s4225_s8 + $0x40] sm:$0xff]  ;;  %v1073_v40 = vld [vmem:[%s4223_s6 + $0x78] sm:$0xff] }
  0x57   : > { %1140 = vmatprep.subr.mxu0 %v1103_v41  ;;  %2939 = vmatprep.subr.mxu1 %v3222_v0  ;;  %v1072_v41 = vld [vmem:[%s4223_s6 + $0x70] sm:$0xff] }
  0x58   : > { %1141 = vmatpush1.msra.mxu0 %v1102_v42  ;;  %2940 = vmatpush3.msra.mxu1 %v1215_v43  ;;  %v1200_v42 = vld [vmem:[%s4225_s8 + $0x38] sm:$0xff]  ;;  %v1071_v43 = vld [vmem:[%s4223_s6 + $0x68] sm:$0xff] }
  0x59   : > { %1142 = vmatprep.subr.mxu0 %v1101_v44  ;;  %2941 = vmatprep.subr.mxu1 %v3222_v0  ;;  %v1070_v44 = vld [vmem:[%s4223_s6 + $0x60] sm:$0xff] }
  0x5a   : > { %1143 = vmatpush1.msra.mxu0 %v1100_v45  ;;  %2942 = vmatpush3.msra.mxu1 %v1214_v46  ;;  %v1199_v45 = vld [vmem:[%s4225_s8 + $0x30] sm:$0xff]  ;;  %v1069_v46 = vld [vmem:[%s4223_s6 + $0x58] sm:$0xff] }
  0x5b   : > { %1144 = vmatprep.subr.mxu0 %v1099_v47  ;;  %2943 = vmatprep.subr.mxu1 %v3222_v0  ;;  %v1068_v47 = vld [vmem:[%s4223_s6 + $0x50] sm:$0xff] }
  0x5c   : > { %1145 = vmatpush1.msra.mxu0 %v1098_v48  ;;  %2944 = vmatpush3.msra.mxu1 %v1213_v49  ;;  %v1198_v48 = vld [vmem:[%s4225_s8 + $0x28] sm:$0xff] }
  0x5d   : > { %1186 = vmatprep.mubr.f32.mxu0 %v3222_v0  ;;  %2945 = vmatprep.subr.mxu1 %v3222_v0  ;;  %v1067_v49 = vld [vmem:[%s4223_s6 + $0x48] sm:$0xff] }
  0x5e   : > { %1146 = vmatprep.subr.mxu0 %v1097_v50  ;;  %2946 = vmatpush3.msra.mxu1 %v1212_v52  ;;  %v1066_v50 = vld [vmem:[%s4223_s6 + $0x40] sm:$0xff]  ;;  %v1065_v52 = vld [vmem:[%s4223_s6 + $0x38] sm:$0xff] }
  0x5f   : > { %1147 = vmatpush1.msra.mxu0 %v1096_v51  ;;  %2947 = vmatprep.subr.mxu1 %v3222_v0  ;;  %v1197_v51 = vld [vmem:[%s4225_s8 + $0x20] sm:$0xff] }
  0x60   : > { %1148 = vmatprep.subr.mxu0 %v1095_v53  ;;  %2948 = vmatpush3.msra.mxu1 %v1211_v55  ;;  %v1064_v53 = vld [vmem:[%s4223_s6 + $0x30] sm:$0xff]  ;;  %v1063_v55 = vld [vmem:[%s4223_s6 + $0x28] sm:$0xff] }
  0x61   : > { %1149 = vmatpush1.msra.mxu0 %v1094_v54  ;;  %2949 = vmatprep.subr.mxu1 %v3222_v0  ;;  %v1196_v54 = vld [vmem:[%s4225_s8 + $0x18] sm:$0xff] }
  0x62   : > { %1150 = vmatprep.subr.mxu0 %v1093_v56  ;;  %2950 = vmatpush3.msra.mxu1 %v1210_v58  ;;  %v1062_v56 = vld [vmem:[%s4223_s6 + $0x20] sm:$0xff]  ;;  %v1061_v58 = vld [vmem:[%s4223_s6 + $0x18] sm:$0xff] }
  0x63   : > { %1151 = vmatpush1.msra.mxu0 %v1092_v57  ;;  %2951 = vmatprep.subr.mxu1 %v3222_v0  ;;  %v1195_v57 = vld [vmem:[%s4225_s8 + $0x10] sm:$0xff] }
  0x64   : > { %1152 = vmatprep.subr.mxu0 %v1091_v59  ;;  %2952 = vmatpush3.msra.mxu1 %v1209_v61  ;;  %v1194_v61 = vld [vmem:[%s4225_s8 + $0x8] sm:$0xff] }
  0x65   : > { %1153 = vmatpush1.msra.mxu0 %v1090_v60  ;;  %2956 = vmatprep.subr.mxu1 %v3222_v0  ;;  %v1060_v60 = vld [vmem:[%s4223_s6 + $0x10] sm:$0xff] }
  0x66   : > { %1295 = vmatprep.subr.mxu0 %v1089_v62  ;;  %721 = vperm.xlu1 %3146, %v718_v63   ;;  %v1059_v63 = vld [vmem:[%s4223_s6 + $0x8] sm:$0xff] }
  0x6a   : > { %1444 = vperm.xlu1 %3146, %v1439_v1   ;;  %v1058_v1 = vld [vmem:[%s4223_s6] sm:$0xff] }
  0x6e   : > { %898 = vperm.xlu1 %3146, %v2708_v2   ;;  %v1193_v2 = vld [vmem:[%s4225_s8] sm:$0xff] }
  0x72   : > { %2058 = vperm.xlu1 %3146, %v2048_v3  }
  0x76   : > { %2065 = vperm.xlu1 %3146, %v2049_v4   ;;  %v1497_v4 = vld [vmem:[%s4227_s10 + $0xf8] sm:$0xff] }
  0xba   : > { %v982_v8 = vpop.permute.xlu0 %981 }
  0xbe   : > { %v813_v59 = vpop.permute.xlu0 %812 }
  0xfc   : > { %v3591_v5 = vpop.f32.mrf.mxu1 }
  0xfd   : > { %v888_v62 = vadd.f32 %v3591_v5, %v813_v59  ;;  %v1496_v5 = vld [vmem:[%s4227_s10 + $0xf0] sm:$0xff] }
  0xfe   : > { %v2910_v6 = vpop.f32.mrf.mxu1 }
  0xff   : > { %v891_v3 = vmax.f32 %v888_v62, 0.0  ;;  %v1495_v6 = vld [vmem:[%s4227_s10 + $0xe8] sm:$0xff] }
 0x100   : > { %v1053_v9 = vpop.f32.mrf.mxu1  ;;  %v3593_v11 = vpop.f32.mrf.mxu0 }
 0x101   : > { %v1054_v10 = vadd.f32 %v1053_v9, %v982_v8  ;;  %v1494_v8 = vld [vmem:[%s4227_s10 + $0xe0] sm:$0xff]  ;;  %v1493_v9 = vld [vmem:[%s4227_s10 + $0xd8] sm:$0xff] }
 0x102   : > { %v2920_v12 = vpop.f32.mrf.mxu1  ;;  %v3601_v16 = vpop.f32.mrf.mxu0 }
 0x103   : > { %v1057_v13 = vmax.f32 %v1054_v10, 0.0  ;;  %v1492_v10 = vld [vmem:[%s4227_s10 + $0xd0] sm:$0xff]  ;;  %v1491_v12 = vld [vmem:[%s4227_s10 + $0xc8] sm:$0xff] }
 0x104   : > { %v3612_v20 = vpop.f32.mrf.mxu0 }
 0x105   : > { %1187 = vmatmul.mubr.f32.vlgmr.msra.gmra.mxu0 %v1057_v13  ;;  %2954 = vmatmul.mubr.f32.vlgmr.msra.gmra.mxu1 %v1057_v13  ;;  %v1490_v13 = vld [vmem:[%s4227_s10 + $0xc0] sm:$0xff] }
 0x106   : > { %1296 = vmatpush1.msra.mxu0 %v1088_v14  ;;  %2957 = vmatpush3.msra.mxu1 %v1208_v15  ;;  %v2915_v24 = vpop.f32.mrf.mxu0  ;;  %v1489_v14 = vld [vmem:[%s4227_s10 + $0xb8] sm:$0xff]  ;;  %v1488_v15 = vld [vmem:[%s4227_s10 + $0xb0] sm:$0xff] }
 0x107   : > { %1297 = vmatprep.subr.mxu0 %v1087_v17  ;;  %2958 = vmatprep.subr.mxu1 %v3222_v0  ;;  %v1487_v17 = vld [vmem:[%s4227_s10 + $0xa8] sm:$0xff]  ;;  %v1481_v24 = vld [vmem:[%s4227_s10 + $0x78] sm:$0xff] }
 0x108   : > { %1298 = vmatpush1.msra.mxu0 %v1086_v18  ;;  %2959 = vmatpush3.msra.mxu1 %v1207_v19  ;;  %v1486_v18 = vld [vmem:[%s4227_s10 + $0xa0] sm:$0xff]  ;;  %v1485_v19 = vld [vmem:[%s4227_s10 + $0x98] sm:$0xff] }
 0x109   : > { %1299 = vmatprep.subr.mxu0 %v1085_v21  ;;  %2960 = vmatprep.subr.mxu1 %v3222_v0  ;;  %v1484_v21 = vld [vmem:[%s4227_s10 + $0x90] sm:$0xff] }
 0x10a   : > { %1300 = vmatpush1.msra.mxu0 %v1084_v22  ;;  %2961 = vmatpush3.msra.mxu1 %v1206_v23  ;;  %v1483_v22 = vld [vmem:[%s4227_s10 + $0x88] sm:$0xff]  ;;  %v1482_v23 = vld [vmem:[%s4227_s10 + $0x80] sm:$0xff] }
 0x10b   : > { %1301 = vmatprep.subr.mxu0 %v1083_v25  ;;  %2962 = vmatprep.subr.mxu1 %v3222_v0  ;;  %v1480_v25 = vld [vmem:[%s4227_s10 + $0x70] sm:$0xff] }
 0x10c   : > { %1302 = vmatpush1.msra.mxu0 %v1082_v26  ;;  %2963 = vmatpush3.msra.mxu1 %v1205_v27  ;;  %v1479_v26 = vld [vmem:[%s4227_s10 + $0x68] sm:$0xff]  ;;  %v1478_v27 = vld [vmem:[%s4227_s10 + $0x60] sm:$0xff] }
 0x10d   : > { %1303 = vmatprep.subr.mxu0 %v1081_v28  ;;  %2964 = vmatprep.subr.mxu1 %v3222_v0  ;;  %v1477_v28 = vld [vmem:[%s4227_s10 + $0x58] sm:$0xff] }
 0x10e   : > { %1304 = vmatpush1.msra.mxu0 %v1080_v29  ;;  %2965 = vmatpush3.msra.mxu1 %v1204_v30  ;;  %v1476_v29 = vld [vmem:[%s4227_s10 + $0x50] sm:$0xff]  ;;  %v1475_v30 = vld [vmem:[%s4227_s10 + $0x48] sm:$0xff] }
 0x10f   : > { %1305 = vmatprep.subr.mxu0 %v1079_v31  ;;  %2966 = vmatprep.subr.mxu1 %v3222_v0  ;;  %v1474_v31 = vld [vmem:[%s4227_s10 + $0x40] sm:$0xff] }
 0x110   : > { %1306 = vmatpush1.msra.mxu0 %v1078_v32  ;;  %2967 = vmatpush3.msra.mxu1 %v1203_v33  ;;  %v1473_v32 = vld [vmem:[%s4227_s10 + $0x38] sm:$0xff]  ;;  %v1472_v33 = vld [vmem:[%s4227_s10 + $0x30] sm:$0xff] }
 0x111   : > { %1307 = vmatprep.subr.mxu0 %v1077_v34  ;;  %2968 = vmatprep.subr.mxu1 %v3222_v0  ;;  %v1471_v34 = vld [vmem:[%s4227_s10 + $0x28] sm:$0xff] }
 0x112   : > { %1308 = vmatpush1.msra.mxu0 %v1076_v35  ;;  %2969 = vmatpush3.msra.mxu1 %v1202_v36  ;;  %v1470_v35 = vld [vmem:[%s4227_s10 + $0x20] sm:$0xff]  ;;  %v1469_v36 = vld [vmem:[%s4227_s10 + $0x18] sm:$0xff] }
 0x113   : > { %1309 = vmatprep.subr.mxu0 %v1075_v37  ;;  %2970 = vmatprep.subr.mxu1 %v3222_v0  ;;  %v1468_v37 = vld [vmem:[%s4227_s10 + $0x10] sm:$0xff] }
 0x114   : > { %1310 = vmatpush1.msra.mxu0 %v1074_v38  ;;  %2971 = vmatpush3.msra.mxu1 %v1201_v39  ;;  %v1467_v38 = vld [vmem:[%s4227_s10 + $0x8] sm:$0xff]  ;;  %v1466_v39 = vld [vmem:[%s4227_s10] sm:$0xff] }
 0x115   : > { %1311 = vmatprep.subr.mxu0 %v1073_v40  ;;  %2972 = vmatprep.subr.mxu1 %v3222_v0  ;;  %v1499_v40 = vld [vmem:[%s4227_s10 + $0x108] sm:$0xff] }
 0x116   : > { %1312 = vmatpush1.msra.mxu0 %v1072_v41  ;;  %2973 = vmatpush3.msra.mxu1 %v1200_v42  ;;  %v1498_v41 = vld [vmem:[%s4227_s10 + $0x100] sm:$0xff] }
 0x117   : > { %1313 = vmatprep.subr.mxu0 %v1071_v43  ;;  %2974 = vmatprep.subr.mxu1 %v3222_v0 }
 0x118   : > { %1314 = vmatpush1.msra.mxu0 %v1070_v44  ;;  %2975 = vmatpush3.msra.mxu1 %v1199_v45  ;;  %v722_v44 = vpop.permute.xlu1 %721 }
 0x119   : > { %1315 = vmatprep.subr.mxu0 %v1069_v46  ;;  %2976 = vmatprep.subr.mxu1 %v3222_v0 }
 0x11a   : > { %1316 = vmatpush1.msra.mxu0 %v1068_v47  ;;  %2977 = vmatpush3.msra.mxu1 %v1198_v48  ;;  %v802_v48 = vadd.f32 %v3593_v11, %v722_v44 }
 0x11b   : > { %1317 = vmatprep.subr.mxu0 %v1067_v49  ;;  %2978 = vmatprep.subr.mxu1 %v3222_v0 }
 0x11c   : > { %1318 = vmatpush1.msra.mxu0 %v1066_v50  ;;  %2979 = vmatpush3.msra.mxu1 %v1197_v51  ;;  %v1445_v45 = vpop.permute.xlu1 %1444  ;;  %v804_v50 = vadd.f32 %v3601_v16, %v722_v44  ;;  %v2719_v44 = vld [vmem:[%s4227_s10 + $0x110] sm:$0xff] }
 0x11d   : > { %1319 = vmatprep.subr.mxu0 %v1065_v52  ;;  %2980 = vmatprep.subr.mxu1 %v3222_v0  ;;  %v806_v52 = vmax.f32 %v802_v48, 0.0 }
 0x11e   : > { %1320 = vmatpush1.msra.mxu0 %v1064_v53  ;;  %2981 = vmatpush3.msra.mxu1 %v1196_v54 }
 0x11f   : > { %1321 = vmatprep.subr.mxu0 %v1063_v55  ;;  %2982 = vmatprep.subr.mxu1 %v3222_v0 }
 0x120   : > { %1322 = vmatpush1.msra.mxu0 %v1062_v56  ;;  %2983 = vmatpush3.msra.mxu1 %v1195_v57  ;;  %v899_v46 = vpop.permute.xlu1 %898  ;;  %v807_v56 = vmax.f32 %v804_v50, 0.0 }
 0x121   : > { %1323 = vmatprep.subr.mxu0 %v1061_v58  ;;  %2984 = vmatprep.subr.mxu1 %v3222_v0  ;;  %v971_v49 = vadd.f32 %v3612_v20, %v899_v46  ;;  %v2751_v46 = vld [vmem:[%s4227_s10 + $0x210] sm:$0xff] }
 0x122   : > { %1324 = vmatpush1.msra.mxu0 %v1060_v60  ;;  %2985 = vmatpush3.msra.mxu1 %v1194_v61 }
 0x123   : > { %1325 = vmatprep.subr.mxu0 %v1059_v63  ;;  %2986 = vmatprep.subr.mxu1 %v3222_v0  ;;  %v974_v53 = vmax.f32 %v971_v49, 0.0 }
 0x124   : > { %1326 = vmatpush1.msra.mxu0 %v1058_v1  ;;  %1359 = vmatprep.mubr.f32.mxu0 %v3222_v0 }
 0x125   : > { %2987 = vmatpush3.msra.mxu1 %v1193_v2  ;;  %2988 = vmatprep.mubr.msk.f32.mxu1 %vm3223_vm0, %v3222_v0  ;;  %v1452_v2 = vpop.permute.xlu0 %1451 }
 0x126   : > { %1360 = vmatmul.mubr.f32.vlgmr.msra.gmra.mxu0 %v891_v3  ;;  %2989 = vmatmul.mubr.f32.vlgmr.msra.gmra.mxu1 %v891_v3 }
 0x127   : > { %1649 = vmatprep.mubr.f32.mxu1 %v3222_v0  ;;  %1504 = vmatprep.subr.mxu0 %v1497_v4 }
 0x128   : > { %1505 = vmatpush1.msra.mxu0 %v1496_v5 }
 0x129   : > { %1506 = vmatprep.subr.mxu0 %v1495_v6 }
 0x12a   : > { %1507 = vmatpush1.msra.mxu0 %v1494_v8 }
 0x12b   : > { %1508 = vmatprep.subr.mxu0 %v1493_v9  ;;  %v1575_v9 = vld [vmem:[%s4231_s14] sm:$0xf] }
 0x12c   : > { %1509 = vmatpush1.msra.mxu0 %v1492_v10  ;;  %v2750_v10 = vld [vmem:[%s4227_s10 + $0x208] sm:$0xff] }
 0x12d   : > { %1510 = vmatprep.subr.mxu0 %v1491_v12  ;;  %v2749_v12 = vld [vmem:[%s4227_s10 + $0x200] sm:$0xff] }
 0x12e   : > { %1511 = vmatpush1.msra.mxu0 %v1490_v13  ;;  %v2748_v13 = vld [vmem:[%s4227_s10 + $0x1f8] sm:$0xff] }
 0x12f   : > { %1512 = vmatprep.subr.mxu0 %v1489_v14  ;;  %v2747_v14 = vld [vmem:[%s4227_s10 + $0x1f0] sm:$0xff] }
 0x130   : > { %1513 = vmatpush1.msra.mxu0 %v1488_v15  ;;  %v2746_v15 = vld [vmem:[%s4227_s10 + $0x1e8] sm:$0xff] }
 0x131   : > { %1514 = vmatprep.subr.mxu0 %v1487_v17  ;;  %v2745_v17 = vld [vmem:[%s4227_s10 + $0x1e0] sm:$0xff] }
 0x132   : > { %1515 = vmatpush1.msra.mxu0 %v1486_v18  ;;  %v2744_v18 = vld [vmem:[%s4227_s10 + $0x1d8] sm:$0xff] }
 0x133   : > { %1516 = vmatprep.subr.mxu0 %v1485_v19  ;;  %v2743_v19 = vld [vmem:[%s4227_s10 + $0x1d0] sm:$0xff] }
 0x134   : > { %1517 = vmatpush1.msra.mxu0 %v1484_v21  ;;  %v2742_v21 = vld [vmem:[%s4227_s10 + $0x1c8] sm:$0xff] }
 0x135   : > { %1518 = vmatprep.subr.mxu0 %v1483_v22  ;;  %v2741_v22 = vld [vmem:[%s4227_s10 + $0x1c0] sm:$0xff] }
 0x136   : > { %1519 = vmatpush1.msra.mxu0 %v1482_v23  ;;  %v2740_v23 = vld [vmem:[%s4227_s10 + $0x1b8] sm:$0xff] }
 0x137   : > { %1520 = vmatprep.subr.mxu0 %v1481_v24  ;;  %v2739_v24 = vld [vmem:[%s4227_s10 + $0x1b0] sm:$0xff] }
 0x138   : > { %1521 = vmatpush1.msra.mxu0 %v1480_v25  ;;  %v2738_v25 = vld [vmem:[%s4227_s10 + $0x1a8] sm:$0xff] }
 0x139   : > { %1522 = vmatprep.subr.mxu0 %v1479_v26  ;;  %v2737_v26 = vld [vmem:[%s4227_s10 + $0x1a0] sm:$0xff] }
 0x13a   : > { %1523 = vmatpush1.msra.mxu0 %v1478_v27  ;;  %v2736_v27 = vld [vmem:[%s4227_s10 + $0x198] sm:$0xff] }
 0x13b   : > { %1524 = vmatprep.subr.mxu0 %v1477_v28  ;;  %v2735_v28 = vld [vmem:[%s4227_s10 + $0x190] sm:$0xff] }
 0x13c   : > { %1525 = vmatpush1.msra.mxu0 %v1476_v29  ;;  %v2734_v29 = vld [vmem:[%s4227_s10 + $0x188] sm:$0xff] }
 0x13d   : > { %1526 = vmatprep.subr.mxu0 %v1475_v30  ;;  %v2733_v30 = vld [vmem:[%s4227_s10 + $0x180] sm:$0xff] }
 0x13e   : > { %1527 = vmatpush1.msra.mxu0 %v1474_v31  ;;  %v2732_v31 = vld [vmem:[%s4227_s10 + $0x178] sm:$0xff] }
 0x13f   : > { %1528 = vmatprep.subr.mxu0 %v1473_v32  ;;  %v2731_v32 = vld [vmem:[%s4227_s10 + $0x170] sm:$0xff] }
 0x140   : > { %1529 = vmatpush1.msra.mxu0 %v1472_v33  ;;  %v2730_v33 = vld [vmem:[%s4227_s10 + $0x168] sm:$0xff] }
 0x141   : > { %1530 = vmatprep.subr.mxu0 %v1471_v34  ;;  %v2729_v34 = vld [vmem:[%s4227_s10 + $0x160] sm:$0xff] }
 0x142   : > { %1531 = vmatpush1.msra.mxu0 %v1470_v35  ;;  %v2728_v35 = vld [vmem:[%s4227_s10 + $0x158] sm:$0xff] }
 0x143   : > { %1532 = vmatprep.subr.mxu0 %v1469_v36  ;;  %v2727_v36 = vld [vmem:[%s4227_s10 + $0x150] sm:$0xff] }
 0x144   : > { %1533 = vmatpush1.msra.mxu0 %v1468_v37  ;;  %v2726_v37 = vld [vmem:[%s4227_s10 + $0x148] sm:$0xff] }
 0x145   : > { %1534 = vmatprep.subr.mxu0 %v1467_v38  ;;  %v2725_v38 = vld [vmem:[%s4227_s10 + $0x140] sm:$0xff] }
 0x146   : > { %1535 = vmatpush1.msra.mxu0 %v1466_v39  ;;  %v2724_v39 = vld [vmem:[%s4227_s10 + $0x138] sm:$0xff] }
 0x147   : > { %1566 = vmatprep.subr.mxu0 %v1499_v40  ;;  %v2723_v40 = vld [vmem:[%s4227_s10 + $0x130] sm:$0xff] }
 0x148   : > { %1567 = vmatpush2.msra.mxu0 %v1498_v41  ;;  %v2722_v41 = vld [vmem:[%s4227_s10 + $0x128] sm:$0xff] }
 0x1c5   : > { %v1291_v42 = vpop.f32.mrf.mxu1  ;;  %v1188_v47 = vpop.f32.mrf.mxu0 }
 0x1c7   : > { %v2955_v43 = vpop.f32.mrf.mxu1  ;;  %v1190_v51 = vpop.f32.mrf.mxu0 }
 0x1c8   : > { %v2720_v43 = vld [vmem:[%s4227_s10 + $0x118] sm:$0xff] }
 0x1e6   : > { %v1361_v54 = vpop.f32.mrf.mxu0  ;;  %v1434_v55 = vpop.f32.mrf.mxu1 }
 0x1e7   : > { %v1362_v57 = vadd.f32 %v1361_v54, %v806_v52  ;;  %v1435_v58 = vadd.f32 %v1434_v55, %v974_v53  ;;  %v2789_v52 = vld [vmem:[%s4227_s10 + $0x318] sm:$0xff]  ;;  %v2788_v53 = vld [vmem:[%s4227_s10 + $0x310] sm:$0xff]  ;;  %v2787_v54 = vld [vmem:[%s4227_s10 + $0x308] sm:$0xff] }
 0x1e8   : > { %v1363_v59 = vpop.f32.mrf.mxu0  ;;  %v2990_v60 = vpop.f32.mrf.mxu1  ;;  %v2786_v55 = vld [vmem:[%s4227_s10 + $0x300] sm:$0xff] }
 0x1e9   : > { %v1366_v61 = vadd.f32 %v1362_v57, %v1188_v47  ;;  %v3865_v62 = vadd.f32 %v1435_v58, %v1291_v42  ;;  %v1364_v63 = vadd.f32 %v1363_v59, %v807_v56  ;;  %v2721_v42 = vld [vmem:[%s4227_s10 + $0x120] sm:$0xff]  ;;  %v2785_v56 = vld [vmem:[%s4227_s10 + $0x2f8] sm:$0xff]  ;;  %v2784_v57 = vld [vmem:[%s4227_s10 + $0x2f0] sm:$0xff] }
 0x1ea   : > { %v2783_v58 = vld [vmem:[%s4227_s10 + $0x2e8] sm:$0xff]  ;;  %v2782_v59 = vld [vmem:[%s4227_s10 + $0x2e0] sm:$0xff]  ;;  %v2781_v60 = vld [vmem:[%s4227_s10 + $0x2d8] sm:$0xff] }
 0x1eb   : > { %v1447_v1 = vmul.f32 %v1445_v45, %v1366_v61  ;;  %v1367_v11 = vadd.f32 %v1364_v63, %v1190_v51  ;;  %v2754_v51 = vld [vmem:[%s4231_s14 + $0x4] sm:$0xf]  ;;  %v2780_v61 = vld [vmem:[%s4227_s10 + $0x2d0] sm:$0xff]  ;;  %v2779_v63 = vld [vmem:[%s4227_s10 + $0x2c8] sm:$0xff] }
 0x1ed   : > { %v1448_v20 = vmul.f32 %v1445_v45, %v1367_v11  ;;  %v1454_v3 = vadd.f32 %v1452_v2, %v1447_v1  ;;  %v2752_v45 = vld [vmem:[%s4227_s10 + $0x218] sm:$0xff]  ;;  %v2778_v1 = vld [vmem:[%s4227_s10 + $0x2c0] sm:$0xff] }
 0x1ee   : > { %v2777_v11 = vld [vmem:[%s4227_s10 + $0x2b8] sm:$0xff] }
 0x1ef   : > { %v1455_v16 = vadd.f32 %v1452_v2, %v1448_v20  ;;  %v3869_v5 = vmax.f32 %v1454_v3, 0.0  ;;  %v2776_v2 = vld [vmem:[%s4227_s10 + $0x2b0] sm:$0xff]  ;;  %v2775_v20 = vld [vmem:[%s4227_s10 + $0x2a8] sm:$0xff]  ;;  %v2774_v3 = vld [vmem:[%s4227_s10 + $0x2a0] sm:$0xff] }
 0x1f1   : > { %v3867_v4 = vmax.f32 %v1455_v16, 0.0  ;;  %v2773_v16 = vld [vmem:[%s4227_s10 + $0x298] sm:$0xff] }
 0x1f3   : > { %2715 = vmatprep.mubr.msk.f32.mxu0 %vm1500_vm3, %v3867_v4 }
 0x1f4   : > { %1569 = vmatmul.mubr.f32.vlgmr.msra.gmra.mxu0 %v3869_v5 }
 0x1f5   : > { %1839 = vmatprep.mubr.f32.mxu0 %v3222_v0 }
 0x2b4   : > { %v1570_v6 = vpop.f32.mrf.mxu0 }
 0x2b6   : > { %v1572_v8 = vpop.f32.mrf.mxu0 }
 0x2b7   : > { %2716 = vmatprep.subr.msk.mxu1 %vm730_vm1, %v1572_v8  ;;  %v2770_v8 = vld [vmem:[%s4227_s10 + $0x280] sm:$0xff] }
 0x2b8   : > { %2717 = vmatpush1.msk.msra.mxu1 %vm730_vm1, %v1570_v6  ;;  %v2771_v6 = vld [vmem:[%s4227_s10 + $0x288] sm:$0xff] }
 0x2b9   : > { %2718 = vmatmul.mubr.msk.f32.vlgmr.msra.gmra.mxu1 %vm726_vm2, %v1575_v9  ;;  %1693 = vmatprep.subr.mxu1 %v2750_v10  ;;  %v2769_v9 = vld [vmem:[%s4227_s10 + $0x278] sm:$0xff]  ;;  %v2768_v10 = vld [vmem:[%s4227_s10 + $0x270] sm:$0xff] }
 0x2ba   : > { %1694 = vmatpush1.msra.mxu1 %v2749_v12  ;;  %2753 = vmatprep.mubr.msk.f32.mxu1 %vm1500_vm3, %v3867_v4  ;;  %v2767_v12 = vld [vmem:[%s4227_s10 + $0x268] sm:$0xff] }
 0x2bb   : > { %1695 = vmatprep.subr.mxu1 %v2748_v13  ;;  %v2766_v13 = vld [vmem:[%s4227_s10 + $0x260] sm:$0xff] }
 0x2bc   : > { %1696 = vmatpush1.msra.mxu1 %v2747_v14  ;;  %v2765_v14 = vld [vmem:[%s4227_s10 + $0x258] sm:$0xff] }
 0x2bd   : > { %1697 = vmatprep.subr.mxu1 %v2746_v15  ;;  %v2764_v15 = vld [vmem:[%s4227_s10 + $0x250] sm:$0xff] }
 0x2be   : > { %1698 = vmatpush1.msra.mxu1 %v2745_v17  ;;  %v2763_v17 = vld [vmem:[%s4227_s10 + $0x248] sm:$0xff] }
 0x2bf   : > { %1699 = vmatprep.subr.mxu1 %v2744_v18  ;;  %v2762_v18 = vld [vmem:[%s4227_s10 + $0x240] sm:$0xff] }
 0x2c0   : > { %1700 = vmatpush1.msra.mxu1 %v2743_v19  ;;  %v2761_v19 = vld [vmem:[%s4227_s10 + $0x238] sm:$0xff] }
 0x2c1   : > { %1701 = vmatprep.subr.mxu1 %v2742_v21  ;;  %v2760_v21 = vld [vmem:[%s4227_s10 + $0x230] sm:$0xff] }
 0x2c2   : > { %1702 = vmatpush1.msra.mxu1 %v2741_v22  ;;  %v2759_v22 = vld [vmem:[%s4227_s10 + $0x228] sm:$0xff] }
 0x2c3   : > { %1703 = vmatprep.subr.mxu1 %v2740_v23  ;;  %v2758_v23 = vld [vmem:[%s4227_s10 + $0x220] sm:$0xff] }
 0x2c4   : > { %1704 = vmatpush1.msra.mxu1 %v2739_v24  ;;  %v2791_v24 = vld [vmem:[%s4227_s10 + $0x328] sm:$0xff] }
 0x2c5   : > { %1705 = vmatprep.subr.mxu1 %v2738_v25  ;;  %v2790_v25 = vld [vmem:[%s4227_s10 + $0x320] sm:$0xff] }
 0x2c6   : > { %1706 = vmatpush1.msra.mxu1 %v2737_v26  ;;  %v2053_v26 = vpop.permute.xlu0 %2052 }
 0x2c7   : > { %1707 = vmatprep.subr.mxu1 %v2736_v27 }
 0x2c8   : > { %1708 = vmatpush1.msra.mxu1 %v2735_v28  ;;  %v3148_v28 = vld [vmem:[%s3408_s23] sm:$0xff]  ;;  %s4261_s23 = sshll.u32 %s4264_s25, 3 }
 0x2c9   : > { %1709 = vmatprep.subr.mxu1 %v2734_v29  ;;  %s710_s30 = scalar_lea.vmem %s4237_s20, %s4261_s23  ;;  %s714_s23 = scalar_lea.vmem %s4238_s21, %s4262_s9 }
 0x2ca   : > { %1710 = vmatpush1.msra.mxu1 %v2733_v30  ;;  %v1461_v27 = vpop.permute.xlu0 %1460 }
 0x2cb   : > { %1711 = vmatprep.subr.mxu1 %v2732_v31  ;;  %v1464_v29 = vadd.f32 %v3148_v28, %v1461_v27  ;;  %v1465_v30 = vadd.f32 %v1461_v27, %v3427_v7  ;;  %v2083_v7 = vld [vmem:[#allocation4 + $0x70] sm:$0xff]  ;;  %v2413_v28 = vld [vmem:[#allocation4 + $0x168] sm:$0xff] }
 0x2cc   : > { %1712 = vmatpush1.msra.mxu1 %v2731_v32  ;;  %v2414_v27 = vld [vmem:[#allocation4 + $0x170] sm:$0xff] }
 0x2cd   : > { %1713 = vmatprep.subr.mxu1 %v2730_v33 }
 0x2ce   : > { %1714 = vmatpush1.msra.mxu1 %v2729_v34 }
 0x2cf   : > { %1715 = vmatprep.subr.mxu1 %v2728_v35 }
 0x2d0   : > { %1716 = vmatpush1.msra.mxu1 %v2727_v36 }
 0x2d1   : > { %1717 = vmatprep.subr.mxu1 %v2726_v37 }
 0x2d2   : > { %1718 = vmatpush1.msra.mxu1 %v2725_v38  ;;  %v2793_v38 = vld [vmem:[%s4231_s14 + $0x8] sm:$0xf] }
 0x2d3   : > { %1719 = vmatprep.subr.mxu1 %v2724_v39  ;;  %v2084_v39 = vld [vmem:[#allocation4 + $0x78] sm:$0xff] }
 0x2d4   : > { %1720 = vmatpush1.msra.mxu1 %v2723_v40  ;;  %v2082_v40 = vld [vmem:[#allocation4 + $0x68] sm:$0xff] }
 0x2d5   : > { %1721 = vmatprep.subr.mxu1 %v2722_v41  ;;  %v2081_v41 = vld [vmem:[#allocation4 + $0x60] sm:$0xff] }
 0x2d6   : > { %1722 = vmatpush1.msra.mxu1 %v2721_v42  ;;  %v2080_v42 = vld [vmem:[#allocation4 + $0x58] sm:$0xff] }
 0x2d7   : > { %1723 = vmatprep.subr.mxu1 %v2720_v43  ;;  %v2079_v43 = vld [vmem:[#allocation4 + $0x50] sm:$0xff] }
 0x2d8   : > { %1724 = vmatpush1.msra.mxu1 %v2719_v44  ;;  %v2078_v44 = vld [vmem:[#allocation4 + $0x48] sm:$0xff] }
 0x2d9   : > { %1755 = vmatprep.subr.mxu1 %v2752_v45  ;;  %v2077_v45 = vld [vmem:[#allocation4 + $0x40] sm:$0xff] }
 0x2da   : > { %1756 = vmatpush2.msra.mxu1 %v2751_v46  ;;  %v2076_v46 = vld [vmem:[#allocation4 + $0x38] sm:$0xff] }
 0x2db   : > { %1758 = vmatmul.mubr.f32.vlgmr.msra.gmra.mxu1 %v3869_v5 }
 0x2dc   : > { %2029 = vmatprep.mubr.f32.mxu1 %v3222_v0 }
 0x379   : > { %v3987_v47 = vpop.f32.mrf.mxu1 }
 0x37a   : > { %v1656_v31 = vadd.f32 %v3987_v47, %v1464_v29  ;;  %v2075_v47 = vld [vmem:[#allocation4 + $0x30] sm:$0xff]  ;;  %v2412_v29 = vld [vmem:[#allocation4 + $0x160] sm:$0xff] }
 0x37b   : > { %v3989_v48 = vpop.f32.mrf.mxu1 }
 0x37c   : > { %v1657_v33 = vadd.f32 %v3989_v48, %v1465_v30  ;;  %v2074_v48 = vld [vmem:[#allocation4 + $0x28] sm:$0xff]  ;;  %v2411_v30 = vld [vmem:[#allocation4 + $0x158] sm:$0xff] }
 0x39b   : > { %v1759_v49 = vpop.f32.mrf.mxu1 }
 0x39d   : > { %v1761_v50 = vpop.f32.mrf.mxu1 }
 0x39e   : > { %2755 = vmatprep.subr.msk.mxu0 %vm730_vm1, %v1761_v50  ;;  %v2055_v50 = vmul.f32 %v2053_v26, %v3865_v62  ;;  %v2249_v62 = vld [vmem:[#allocation4 + $0xf8] sm:$0xff] }
 0x39f   : > { %2756 = vmatpush1.msk.msra.mxu0 %vm730_vm1, %v1759_v49  ;;  %v2073_v49 = vld [vmem:[#allocation4 + $0x20] sm:$0xff] }
 0x3a0   : > { %2757 = vmatmul.mubr.msk.f32.vlgmr.msra.gmra.mxu0 %vm726_vm2, %v2754_v51  ;;  %1883 = vmatprep.subr.mxu0 %v2789_v52  ;;  %v2072_v51 = vld [vmem:[#allocation4 + $0x18] sm:$0xff]  ;;  %v2071_v52 = vld [vmem:[#allocation4 + $0x10] sm:$0xff] }
 0x3a1   : > { %1884 = vmatpush1.msra.mxu0 %v2788_v53  ;;  %2792 = vmatprep.mubr.msk.f32.mxu0 %vm1500_vm3, %v3867_v4  ;;  %v2772_v4 = vld [vmem:[%s4227_s10 + $0x290] sm:$0xff]  ;;  %v2059_v53 = vpop.permute.xlu1 %2058 }
 0x3a2   : > { %1885 = vmatprep.subr.mxu0 %v2787_v54  ;;  %v2061_v54 = vadd.f32 %v2059_v53, %v2055_v50 }
 0x3a3   : > { %1886 = vmatpush1.msra.mxu0 %v2786_v55  ;;  %v2070_v55 = vld [vmem:[#allocation4 + $0x8] sm:$0xff] }
 0x3a4   : > { %1887 = vmatprep.subr.mxu0 %v2785_v56  ;;  %v2069_v56 = vld [vmem:[#allocation4] sm:$0xff] }
 0x3a5   : > { %1888 = vmatpush1.msra.mxu0 %v2784_v57  ;;  %v4137_v57 = vmax.f32 %v2061_v54, 0.0 }
 0x3a6   : > { %1889 = vmatprep.subr.mxu0 %v2783_v58  ;;  %v2248_v58 = vld [vmem:[#allocation4 + $0xf0] sm:$0xff] }
 0x3a7   : > { %1890 = vmatpush1.msra.mxu0 %v2782_v59  ;;  %v2247_v59 = vld [vmem:[#allocation4 + $0xe8] sm:$0xff] }
 0x3a8   : > { %1891 = vmatprep.subr.mxu0 %v2781_v60  ;;  %v2246_v60 = vld [vmem:[#allocation4 + $0xe0] sm:$0xff] }
 0x3a9   : > { %1892 = vmatpush1.msra.mxu0 %v2780_v61  ;;  %v2245_v61 = vld [vmem:[#allocation4 + $0xd8] sm:$0xff] }
 0x3aa   : > { %1893 = vmatprep.subr.mxu0 %v2779_v63  ;;  %v2244_v63 = vld [vmem:[#allocation4 + $0xd0] sm:$0xff] }
 0x3ab   : > { %1894 = vmatpush1.msra.mxu0 %v2778_v1  ;;  %v2243_v1 = vld [vmem:[#allocation4 + $0xc8] sm:$0xff] }
 0x3ac   : > { %1895 = vmatprep.subr.mxu0 %v2777_v11  ;;  %v2242_v11 = vld [vmem:[#allocation4 + $0xc0] sm:$0xff] }
 0x3ad   : > { %1896 = vmatpush1.msra.mxu0 %v2776_v2  ;;  %v2241_v2 = vld [vmem:[#allocation4 + $0xb8] sm:$0xff] }
 0x3ae   : > { %1897 = vmatprep.subr.mxu0 %v2775_v20  ;;  %v2240_v20 = vld [vmem:[#allocation4 + $0xb0] sm:$0xff] }
 0x3af   : > { %1898 = vmatpush1.msra.mxu0 %v2774_v3  ;;  %v2239_v3 = vld [vmem:[#allocation4 + $0xa8] sm:$0xff] }
 0x3b0   : > { %1899 = vmatprep.subr.mxu0 %v2773_v16  ;;  %v2238_v16 = vld [vmem:[#allocation4 + $0xa0] sm:$0xff] }
 0x3b1   : > { %1900 = vmatpush1.msra.mxu0 %v2772_v4  ;;  %v2237_v4 = vld [vmem:[#allocation4 + $0x98] sm:$0xff] }
 0x3b2   : > { %1901 = vmatprep.subr.mxu0 %v2771_v6  ;;  %v2236_v6 = vld [vmem:[#allocation4 + $0x90] sm:$0xff] }
 0x3b3   : > { %1902 = vmatpush1.msra.mxu0 %v2770_v8  ;;  %v2235_v8 = vld [vmem:[#allocation4 + $0x88] sm:$0xff] }
 0x3b4   : > { %1903 = vmatprep.subr.mxu0 %v2769_v9  ;;  %v2234_v9 = vld [vmem:[#allocation4 + $0x80] sm:$0xff] }
 0x3b5   : > { %1904 = vmatpush1.msra.mxu0 %v2768_v10 }
 0x3b6   : > { %1905 = vmatprep.subr.mxu0 %v2767_v12 }
 0x3b7   : > { %1906 = vmatpush1.msra.mxu0 %v2766_v13 }
 0x3b8   : > { %1907 = vmatprep.subr.mxu0 %v2765_v14 }
 0x3b9   : > { %1908 = vmatpush1.msra.mxu0 %v2764_v15 }
 0x3ba   : > { %1909 = vmatprep.subr.mxu0 %v2763_v17 }
 0x3bb   : > { %1910 = vmatpush1.msra.mxu0 %v2762_v18 }
 0x3bc   : > { %1911 = vmatprep.subr.mxu0 %v2761_v19  ;;  %v2155_v19 = vld [vmem:[%s4235_s18] sm:$0xf] }
 0x3bd   : > { %1912 = vmatpush1.msra.mxu0 %v2760_v21 }
 0x3be   : > { %1913 = vmatprep.subr.mxu0 %v2759_v22 }
 0x3bf   : > { %1914 = vmatpush1.msra.mxu0 %v2758_v23  ;;  %v2799_v23 = vld [vmem:[%s4235_s18 + $0x4] sm:$0xf] }
 0x3c0   : > { %1945 = vmatprep.subr.mxu0 %v2791_v24 }
 0x3c1   : > { %1946 = vmatpush2.msra.mxu0 %v2790_v25  ;;  %v2415_v25 = vld [vmem:[#allocation4 + $0x178] sm:$0xff] }
 0x3c2   : > { %1948 = vmatmul.mubr.f32.vlgmr.msra.gmra.mxu0 %v3869_v5  ;;  %3026 = vmatprep.subr.mxu0 %v3222_v0 }
 0x3c3   : > { %3028 = vmatprep.mubr.msk.f32.mxu0 %vm3223_vm0, %v3222_v0 }
 0x460   : > { %v1841_v32 = vpop.f32.mrf.mxu0 }
 0x461   : > { %v4109_v34 = vadd.f32 %v1841_v32, %v1656_v31  ;;  %v2410_v31 = vld [vmem:[#allocation4 + $0x150] sm:$0xff]  ;;  %v2409_v32 = vld [vmem:[#allocation4 + $0x148] sm:$0xff] }
 0x462   : > { %v1843_v35 = vpop.f32.mrf.mxu0 }
 0x463   : > { %v4111_v5 = vadd.f32 %v1843_v35, %v1657_v33  ;;  %v2408_v33 = vld [vmem:[#allocation4 + $0x140] sm:$0xff]  ;;  %v2406_v35 = vld [vmem:[#allocation4 + $0x130] sm:$0xff] }
 0x482   : > { %v1949_v36 = vpop.f32.mrf.mxu0 }
 0x484   : > { %v1951_v37 = vpop.f32.mrf.mxu0 }
 0x485   : > { %2794 = vmatprep.subr.msk.mxu1 %vm730_vm1, %v1951_v37  ;;  %v2403_v37 = vld [vmem:[#allocation4 + $0x118] sm:$0xff] }
 0x486   : > { %2795 = vmatpush1.msk.msra.mxu1 %vm730_vm1, %v1949_v36  ;;  %v2404_v36 = vld [vmem:[#allocation4 + $0x120] sm:$0xff] }
 0x487   : > { %2796 = vmatmul.mubr.msk.f32.vlgmr.msra.gmra.mxu1 %vm726_vm2, %v2793_v38  ;;  %2991 = vmatprep.subr.mxu1 %v3222_v0  ;;  %v2402_v38 = vld [vmem:[#allocation4 + $0x110] sm:$0xff] }
 0x488   : > { %2992 = vmatpush3.msra.mxu1 %v2084_v39  ;;  %3023 = vmatprep.mubr.msk.f32.mxu1 %vm3223_vm0, %v3222_v0  ;;  %v2401_v39 = vld [vmem:[#allocation4 + $0x108] sm:$0xff] }
 0x489   : > { %2993 = vmatprep.subr.mxu1 %v3222_v0 }
 0x48a   : > { %2994 = vmatpush3.msra.mxu1 %v2083_v7  ;;  %v2400_v7 = vld [vmem:[#allocation4 + $0x100] sm:$0xff] }
 0x48b   : > { %2995 = vmatprep.subr.mxu1 %v3222_v0 }
 0x48c   : > { %2996 = vmatpush3.msra.mxu1 %v2082_v40 }
 0x48d   : > { %2997 = vmatprep.subr.mxu1 %v3222_v0 }
 0x48e   : > { %2998 = vmatpush3.msra.mxu1 %v2081_v41 }
 0x48f   : > { %2999 = vmatprep.subr.mxu1 %v3222_v0 }
 0x490   : > { %3000 = vmatpush3.msra.mxu1 %v2080_v42  ;;  %v2066_v42 = vpop.permute.xlu1 %2065 }
 0x491   : > { %3001 = vmatprep.subr.mxu1 %v3222_v0 }
 0x492   : > { %3002 = vmatpush3.msra.mxu1 %v2079_v43  ;;  %v3149_v43 = vld [vmem:[%s3401_s4] sm:$0xf] }
 0x493   : > { %3003 = vmatprep.subr.mxu1 %v3222_v0 }
 0x494   : > { %3004 = vmatpush3.msra.mxu1 %v2078_v44  ;;  %v2068_v44 = vadd.f32 %v3149_v43, %v2066_v42 }
 0x495   : > { %3005 = vmatprep.subr.mxu1 %v3222_v0 }
 0x496   : > { %3006 = vmatpush3.msra.mxu1 %v2077_v45 }
 0x497   : > { %3007 = vmatprep.subr.mxu1 %v3222_v0 }
 0x498   : > { %3008 = vmatpush3.msra.mxu1 %v2076_v46 }
 0x499   : > { %3009 = vmatprep.subr.mxu1 %v3222_v0 }
 0x49a   : > { %3010 = vmatpush3.msra.mxu1 %v2075_v47 }
 0x49b   : > { %3011 = vmatprep.subr.mxu1 %v3222_v0 }
 0x49c   : > { %3012 = vmatpush3.msra.mxu1 %v2074_v48 }
 0x49d   : > { %3013 = vmatprep.subr.mxu1 %v3222_v0 }
 0x49e   : > { %3014 = vmatpush3.msra.mxu1 %v2073_v49  ;;  %v2802_v49 = vld [vmem:[%s4235_s18 + $0x8] sm:$0xf] }
 0x49f   : > { %3015 = vmatprep.subr.mxu1 %v3222_v0 }
 0x4a0   : > { %3016 = vmatpush3.msra.mxu1 %v2072_v51 }
 0x4a1   : > { %3017 = vmatprep.subr.mxu1 %v3222_v0 }
 0x4a2   : > { %3018 = vmatpush3.msra.mxu1 %v2071_v52 }
 0x4a3   : > { %3019 = vmatprep.subr.mxu1 %v3222_v0 }
 0x4a4   : > { %3020 = vmatpush3.msra.mxu1 %v2070_v55 }
 0x4a5   : > { %3021 = vmatprep.subr.mxu1 %v3222_v0 }
 0x4a6   : > { %3022 = vmatpush3.msra.mxu1 %v2069_v56 }
 0x4a7   : > { %3024 = vmatmul.mubr.f32.vlgmr.msra.gmra.mxu1 %v4137_v57  ;;  %3031 = vmatprep.subr.mxu1 %v3222_v0 }
 0x4a8   : > { %3032 = vmatpush3.msra.mxu1 %v2249_v62  ;;  %3063 = vmatprep.mubr.msk.f32.mxu1 %vm3223_vm0, %v3222_v0 }
 0x4a9   : > { %3033 = vmatprep.subr.mxu1 %v3222_v0 }
 0x4aa   : > { %3034 = vmatpush3.msra.mxu1 %v2248_v58 }
 0x4ab   : > { %3035 = vmatprep.subr.mxu1 %v3222_v0 }
 0x4ac   : > { %3036 = vmatpush3.msra.mxu1 %v2247_v59 }
 0x4ad   : > { %3037 = vmatprep.subr.mxu1 %v3222_v0 }
 0x4ae   : > { %3038 = vmatpush3.msra.mxu1 %v2246_v60 }
 0x4af   : > { %3039 = vmatprep.subr.mxu1 %v3222_v0 }
 0x4b0   : > { %3040 = vmatpush3.msra.mxu1 %v2245_v61 }
 0x4b1   : > { %3041 = vmatprep.subr.mxu1 %v3222_v0 }
 0x4b2   : > { %3042 = vmatpush3.msra.mxu1 %v2244_v63 }
 0x4b3   : > { %3043 = vmatprep.subr.mxu1 %v3222_v0 }
 0x4b4   : > { %3044 = vmatpush3.msra.mxu1 %v2243_v1 }
 0x4b5   : > { %3045 = vmatprep.subr.mxu1 %v3222_v0 }
 0x4b6   : > { %3046 = vmatpush3.msra.mxu1 %v2242_v11 }
 0x4b7   : > { %3047 = vmatprep.subr.mxu1 %v3222_v0 }
 0x4b8   : > { %3048 = vmatpush3.msra.mxu1 %v2241_v2 }
 0x4b9   : > { %3049 = vmatprep.subr.mxu1 %v3222_v0 }
 0x4ba   : > { %3050 = vmatpush3.msra.mxu1 %v2240_v20 }
 0x4bb   : > { %3051 = vmatprep.subr.mxu1 %v3222_v0 }
 0x4bc   : > { %3052 = vmatpush3.msra.mxu1 %v2239_v3 }
 0x4bd   : > { %3053 = vmatprep.subr.mxu1 %v3222_v0 }
 0x4be   : > { %3054 = vmatpush3.msra.mxu1 %v2238_v16 }
 0x4bf   : > { %3055 = vmatprep.subr.mxu1 %v3222_v0 }
 0x4c0   : > { %3056 = vmatpush3.msra.mxu1 %v2237_v4 }
 0x4c1   : > { %3057 = vmatprep.subr.mxu1 %v3222_v0 }
 0x4c2   : > { %3058 = vmatpush3.msra.mxu1 %v2236_v6 }
 0x4c3   : > { %3059 = vmatprep.subr.mxu1 %v3222_v0 }
 0x4c4   : > { %3060 = vmatpush3.msra.mxu1 %v2235_v8 }
 0x4c5   : > { %3061 = vmatprep.subr.mxu1 %v3222_v0 }
 0x4c6   : > { %3062 = vmatpush3.msra.mxu1 %v2234_v9 }
 0x4c7   : > { %3064 = vmatmul.mubr.f32.vlgmr.msra.gmra.mxu1 %v4137_v57  ;;  %3106 = vmatprep.subr.mxu1 %v3222_v0 }
 0x4c8   : > { %3108 = vmatprep.mubr.msk.f32.mxu1 %vm3223_vm0, %v3222_v0 }
 0x547   : > { %v2031_v10 = vpop.f32.mrf.mxu1 }
 0x548   : > { %v2036_v12 = vadd.f32 %v2031_v10, %v4109_v34  ;;  %v2407_v34 = vld [vmem:[#allocation4 + $0x138] sm:$0xff] }
 0x549   : > { %v2033_v13 = vpop.f32.mrf.mxu1 }
 0x54a   : > { %v2037_v14 = vadd.f32 %v2033_v13, %v4111_v5  ;;  %v2038_v15 = vmax.f32 %v2036_v12, 0.0  ;;  %v2405_v5 = vld [vmem:[#allocation4 + $0x128] sm:$0xff] }
 0x54c   : > { %v2039_v17 = vmax.f32 %v2037_v14, 0.0 }
 0x54e   : > { %v2042_v18 = vcombine.low %v2038_v15, %v2039_v17 }
 0x550   : > { %2046 = vst.msk [vmem:[%s710_s30] sm:$0xff] %vm2045_vm5, %v2042_v18 }
 0x567   : > { %v2151_v21 = vpop.f32.mrf.mxu1 }
 0x568   : > { %3027 = vmatpush3.msk.msra.mxu0 %vm730_vm1, %v2151_v21 }
 0x569   : > { %v3025_v22 = vpop.f32.mrf.mxu1  ;;  %3029 = vmatmul.mubr.msk.f32.vlgmr.msra.gmra.mxu0 %vm726_vm2, %v2155_v19  ;;  %3066 = vmatprep.subr.mxu0 %v3222_v0 }
 0x56a   : > { %3068 = vmatprep.mubr.msk.f32.mxu0 %vm3223_vm0, %v3222_v0 }
 0x587   : > { %v2316_v24 = vpop.f32.mrf.mxu1 }
 0x588   : > { %3067 = vmatpush3.msk.msra.mxu0 %vm730_vm1, %v2316_v24 }
 0x589   : > { %v3065_v26 = vpop.f32.mrf.mxu1  ;;  %3069 = vmatmul.mubr.msk.f32.vlgmr.msra.gmra.mxu0 %vm726_vm2, %v2799_v23  ;;  %3071 = vmatprep.subr.mxu0 %v3222_v0 }
 0x58a   : > { %3072 = vmatpush3.msra.mxu0 %v2415_v25  ;;  %3103 = vmatprep.mubr.msk.f32.mxu0 %vm3223_vm0, %v3222_v0 }
 0x58b   : > { %3073 = vmatprep.subr.mxu0 %v3222_v0 }
 0x58c   : > { %3074 = vmatpush3.msra.mxu0 %v2414_v27 }
 0x58d   : > { %3075 = vmatprep.subr.mxu0 %v3222_v0 }
 0x58e   : > { %3076 = vmatpush3.msra.mxu0 %v2413_v28 }
 0x58f   : > { %3077 = vmatprep.subr.mxu0 %v3222_v0 }
 0x590   : > { %3078 = vmatpush3.msra.mxu0 %v2412_v29 }
 0x591   : > { %3079 = vmatprep.subr.mxu0 %v3222_v0 }
 0x592   : > { %3080 = vmatpush3.msra.mxu0 %v2411_v30 }
 0x593   : > { %3081 = vmatprep.subr.mxu0 %v3222_v0 }
 0x594   : > { %3082 = vmatpush3.msra.mxu0 %v2410_v31 }
 0x595   : > { %3083 = vmatprep.subr.mxu0 %v3222_v0 }
 0x596   : > { %3084 = vmatpush3.msra.mxu0 %v2409_v32 }
 0x597   : > { %3085 = vmatprep.subr.mxu0 %v3222_v0 }
 0x598   : > { %3086 = vmatpush3.msra.mxu0 %v2408_v33 }
 0x599   : > { %3087 = vmatprep.subr.mxu0 %v3222_v0 }
 0x59a   : > { %3088 = vmatpush3.msra.mxu0 %v2407_v34 }
 0x59b   : > { %3089 = vmatprep.subr.mxu0 %v3222_v0 }
 0x59c   : > { %3090 = vmatpush3.msra.mxu0 %v2406_v35 }
 0x59d   : > { %3091 = vmatprep.subr.mxu0 %v3222_v0 }
 0x59e   : > { %3092 = vmatpush3.msra.mxu0 %v2405_v5 }
 0x59f   : > { %3093 = vmatprep.subr.mxu0 %v3222_v0 }
 0x5a0   : > { %3094 = vmatpush3.msra.mxu0 %v2404_v36 }
 0x5a1   : > { %3095 = vmatprep.subr.mxu0 %v3222_v0 }
 0x5a2   : > { %3096 = vmatpush3.msra.mxu0 %v2403_v37 }
 0x5a3   : > { %3097 = vmatprep.subr.mxu0 %v3222_v0 }
 0x5a4   : > { %3098 = vmatpush3.msra.mxu0 %v2402_v38 }
 0x5a5   : > { %3099 = vmatprep.subr.mxu0 %v3222_v0 }
 0x5a6   : > { %3100 = vmatpush3.msra.mxu0 %v2401_v39 }
 0x5a7   : > { %3101 = vmatprep.subr.mxu0 %v3222_v0 }
 0x5a8   : > { %3102 = vmatpush3.msra.mxu0 %v2400_v7 }
 0x5a9   : > { %3104 = vmatmul.mubr.f32.vlgmr.msra.gmra.mxu0 %v4137_v57 }
 0x629   : > { %v2228_v40 = vpop.f32.mrf.mxu0 }
 0x62a   : > { %v2232_v45 = vadd.f32 %v2228_v40, %v2068_v44 }
 0x62b   : > { %v3030_v41 = vpop.f32.mrf.mxu0 }
 0x649   : > { %v2394_v46 = vpop.f32.mrf.mxu0 }
 0x64a   : > { %v2398_v47 = vadd.f32 %v2394_v46, %v2232_v45 }
 0x64b   : > { %v3070_v48 = vpop.f32.mrf.mxu0 }
 0x669   : > { %v2482_v50 = vpop.f32.mrf.mxu0 }
 0x66a   : > { %3107 = vmatpush3.msk.msra.mxu1 %vm730_vm1, %v2482_v50 }
 0x66b   : > { %v3105_v0 = vpop.f32.mrf.mxu0  ;;  %3109 = vmatmul.mubr.msk.f32.vlgmr.msra.gmra.mxu1 %vm726_vm2, %v2802_v49 }
 0x72b   : > { %v2560_v51 = vpop.f32.mrf.mxu1 }
 0x72c   : > { %v2564_v52 = vadd.f32 %v2560_v51, %v2398_v47 }
 0x72d   : > { %v3110_v53 = vpop.f32.mrf.mxu1 }
 0x72e   : > { %v2565_v54 = vmax.f32 %v2564_v52, 0.0 }
 0x730   : > { %2566 = vst [vmem:[%s714_s23] sm:$0xf] %v2565_v54 }
 0x731 PF: > { %s34_s2 = sadd.s32 1, %s3216_s2  }
 0x732   : > { %p31_p2 = scmp.ge.s32.totalorder %s34_s2, 4  }
 0x734   :  { %33 = sbr.rel (!%p31_p2) target bundleno = 11 (0xb), region = 166 }
 0x739   :  { %2602 = vsyncpa [#allocation3], 1 }
 0x73a   :  { %2604 = vsyncpa [#allocation3 + $0x1], 1 }
 0x73b   :  { %2605 = vsyncpa [#allocation5], 1 }

</bundles_post_ra>
